<compile_context>
chip_gen: v7x
topology: tpu7x:2x2x1
jax: 0.10.0
libtpu: 0.0.40
codegen_flags: <defaults>
</compile_context>

<pallas_src>
import functools

import jax
import jax.numpy as jnp
from jax.experimental import pallas as pl
from jax.experimental.pallas import tpu as pltpu

EPS = 1e-5
NEG_SLOPE = 0.2


def _resblock_kernel(N, H, W, C,
                     x_ref, w1_ref, w2_ref, g1_ref, bt1_ref, g2_ref, bt2_ref,
                     fold_ref, expand_ref,
                     out_ref, pad_ref):
    WC = W * C
    inv_count = 1.0 / float(N * H * W)

    # Zero only the 1-row H halo of the scratch; it stays zero for both convs.
    pad_ref[:, 0:1, :] = jnp.zeros((N, 1, WC), jnp.float32)
    pad_ref[:, H + 1:H + 2, :] = jnp.zeros((N, 1, WC), jnp.float32)

    def conv(w_ref):
        # One fused matmul per conv: lane-concat the 3 H-shifts -> (N*H, 3*W*C) operand,
        # W taps / W zero-padding live inside the block-banded weight.
        a = jnp.concatenate([pad_ref[:, dy:dy + H, :] for dy in range(3)], axis=-1)
        a = a.reshape(N * H, 3 * WC)
        return jnp.dot(a, w_ref[...], preferred_element_type=jnp.float32)  # (N*H, W*C)

    def batch_norm(h, g_ref, bt_ref):
        # One-pass batch stats (sum & sum of squares), folded to per-channel with a tiny matmul
        # so the elementwise apply stays on the lane-dense (w*C + c) layout.
        rs = jnp.sum(h, axis=0, keepdims=True)                                   # (1, W*C)
        rss = jnp.sum(h * h, axis=0, keepdims=True)                              # (1, W*C)
        csum = jnp.dot(rs, fold_ref[...], preferred_element_type=jnp.float32)    # (1, C)
        csumsq = jnp.dot(rss, fold_ref[...], preferred_element_type=jnp.float32)
        mean = csum * inv_count
        var = csumsq * inv_count - mean * mean                                   # biased variance
        scale = g_ref[...] * jax.lax.rsqrt(var + EPS)                            # (1, C)
        shift = bt_ref[...] - mean * scale                                       # (1, C)
        scale_l = jnp.dot(scale, expand_ref[...], preferred_element_type=jnp.float32)  # (1, W*C)
        shift_l = jnp.dot(shift, expand_ref[...], preferred_element_type=jnp.float32)
        return h * scale_l + shift_l                                             # fused scale/shift

    x = x_ref[...]                               # (N, H, W*C) lane-dense input (also the residual)
    pad_ref[:, 1:H + 1, :] = x

    h = conv(w1_ref)
    h = batch_norm(h, g1_ref, bt1_ref)
    h = jnp.where(h > 0, h, NEG_SLOPE * h)       # LeakyReLU(0.2)

    pad_ref[:, 1:H + 1, :] = h.reshape(N, H, WC)
    h2 = conv(w2_ref)
    h2 = batch_norm(h2, g2_ref, bt2_ref)

    out_ref[...] = h2.reshape(N, H, WC) + x      # residual add, aligned lane-dense store


def _band_weights(w, W):
    """PyTorch conv weight (Cout, Cin, 3, 3) -> block-banded (3*W*Cin, W*Cout) matmul weight.

    Row index = dy*(W*Cin) + wi*Cin + ci, col index = wo*Cout + co.
    Zero blocks outside |wi - wo| <= 1 implement the W-direction zero padding exactly.
    """
    Cout, Cin, _, _ = w.shape
    wi = jnp.arange(W)[:, None]
    wo = jnp.arange(W)[None, :]
    kx = wi - wo + 1                                  # (W, W) kernel x-tap index
    valid = (kx >= 0) & (kx <= 2)
    kx_c = jnp.clip(kx, 0, 2)
    w_t = jnp.transpose(w, (2, 3, 1, 0))              # (ky, kx, Cin, Cout)
    blocks = w_t[:, kx_c, :, :]                       # (3, W, W, Cin, Cout) = (dy, wi, wo, ci, co)
    blocks = jnp.where(valid[None, :, :, None, None], blocks, 0.0)
    band = jnp.transpose(blocks, (0, 1, 3, 2, 4))     # (dy, wi, ci, wo, co)
    return band.reshape(3 * W * Cin, W * Cout).astype(jnp.float32)


def resblock_forward(x_nchw, params):
    """x_nchw: (N, C, H, W) float32, PyTorch layout. Returns NCHW."""
    N, Cin, H, W = x_nchw.shape
    Cout = 16
    assert Cin == Cout, "ResBlock residual add requires in_channels == 16"
    C = Cout
    WC = W * C

    # NCHW -> lane-dense (N, H, W*C). Same buffer is the conv input and the residual.
    x_ld = jnp.transpose(x_nchw, (0, 2, 3, 1)).astype(jnp.float32).reshape(N, H, WC)

    w1b = _band_weights(params["w1"].astype(jnp.float32), W)   # (3*W*C, W*C)
    w2b = _band_weights(params["w2"].astype(jnp.float32), W)
    # NOTE: conv biases b1/b2 are intentionally NOT passed to the kernel: a per-channel bias added
    # immediately before training-mode BatchNorm cancels exactly in (h - mean(h)).

    g1 = params["g1"].reshape(1, C).astype(jnp.float32)
    bt1 = params["bt1"].reshape(1, C).astype(jnp.float32)
    g2 = params["g2"].reshape(1, C).astype(jnp.float32)
    bt2 = params["bt2"].reshape(1, C).astype(jnp.float32)

    # Lane-group fold (W*C -> C) / expand (C -> W*C) matrices for per-channel BN statistics
    # on the interleaved (w*C + c) lane layout.
    fold = jnp.tile(jnp.eye(C, dtype=jnp.float32), (W, 1))     # (W*C, C)
    expand = fold.T                                            # (C, W*C)

    flops = 2 * (2 * (N * H) * (3 * WC) * WC) + 8 * 2 * WC * C + 16 * N * H * WC
    bytes_accessed = 4 * (2 * N * H * WC + 2 * 3 * WC * WC + 2 * WC * C + 8 * C)

    kernel = functools.partial(_resblock_kernel, N, H, W, C)
    vmem = pl.BlockSpec(memory_space=pltpu.MemorySpace.VMEM)
    out = pl.pallas_call(
        kernel,
        out_shape=jax.ShapeDtypeStruct((N, H, WC), jnp.float32),
        in_specs=[vmem] * 9,
        out_specs=vmem,
        scratch_shapes=[pltpu.VMEM((N, H + 2, WC), jnp.float32)],
        cost_estimate=pl.CostEstimate(flops=flops, transcendentals=2 * C,
                                      bytes_accessed=bytes_accessed),
    )(x_ld, w1b, w2b, g1, bt1, g2, bt2, fold, expand)

    # lane-dense (N, H, W*C) -> NCHW
    return jnp.transpose(out.reshape(N, H, W, C), (0, 3, 1, 2))


def resblock_ref(x_nchw, params):
    """Pure-JAX reference (NCHW), mirroring the PyTorch forward (biases included)."""
    x = x_nchw.astype(jnp.float32)

    def conv(h, w, b):
        y = jax.lax.conv_general_dilated(
            h, w, window_strides=(1, 1), padding=((1, 1), (1, 1)),
            dimension_numbers=("NCHW", "OIHW", "NCHW"))
        return y + b.reshape(1, -1, 1, 1)

    def bn(h, g, bt):
        m = jnp.mean(h, axis=(0, 2, 3), keepdims=True)
        v = jnp.mean((h - m) ** 2, axis=(0, 2, 3), keepdims=True)
        return (h - m) * jax.lax.rsqrt(v + EPS) * g.reshape(1, -1, 1, 1) + bt.reshape(1, -1, 1, 1)

    h = conv(x, params["w1"], params["b1"])
    h = bn(h, params["g1"], params["bt1"])
    h = jnp.where(h > 0, h, NEG_SLOPE * h)
    h = conv(h, params["w2"], params["b2"])
    h = bn(h, params["g2"], params["bt2"])
    return h + x


def init_params(key, in_channels=16):
    k1, k2, k3, k4 = jax.random.split(key, 4)
    return {
        "w1": 0.1 * jax.random.normal(k1, (16, in_channels, 3, 3), jnp.float32),
        "b1": 0.1 * jax.random.normal(k2, (16,), jnp.float32),
        "g1": jnp.ones((16,), jnp.float32),
        "bt1": jnp.zeros((16,), jnp.float32),
        "w2": 0.1 * jax.random.normal(k3, (16, 16, 3, 3), jnp.float32),
        "b2": 0.1 * jax.random.normal(k4, (16,), jnp.float32),
        "g2": jnp.ones((16,), jnp.float32),
        "bt2": jnp.zeros((16,), jnp.float32),
    }


if __name__ == "__main__":
    key = jax.random.PRNGKey(0)
    kx, kp = jax.random.split(key)
    N, C, H, W = 2, 16, 16, 16            # in_channels=16 (module default; residual requires it)
    x = jax.random.normal(kx, (N, C, H, W), jnp.float32)
    params = init_params(kp, in_channels=C)

    out = jax.block_until_ready(resblock_forward(x, params))
    ref = jax.block_until_ready(resblock_ref(x, params))

    assert out.shape == ref.shape == (N, 16, H, W)
    err = jnp.max(jnp.abs(out - ref))
    assert jnp.allclose(out, ref, atol=2e-3, rtol=2e-3), f"max abs err {err}"

    print("KERNEL_OK")
</pallas_src>

<mosaic_0001>
module attributes {stable_mosaic.version = 11 : i64} {
  func.func @_resblock_kernel(%arg0: memref<2x16x256xf32, #tpu.memory_space<vmem>>, %arg1: memref<768x256xf32, #tpu.memory_space<vmem>>, %arg2: memref<768x256xf32, #tpu.memory_space<vmem>>, %arg3: memref<1x16xf32, #tpu.memory_space<vmem>>, %arg4: memref<1x16xf32, #tpu.memory_space<vmem>>, %arg5: memref<1x16xf32, #tpu.memory_space<vmem>>, %arg6: memref<1x16xf32, #tpu.memory_space<vmem>>, %arg7: memref<256x16xf32, #tpu.memory_space<vmem>>, %arg8: memref<16x256xf32, #tpu.memory_space<vmem>>, %arg9: memref<2x16x256xf32, #tpu.memory_space<vmem>>, %arg10: memref<2x18x256xf32, #tpu.memory_space<vmem>>) attributes {dimension_semantics = [], scalar_prefetch = 0 : i64, scratch_operands = 1 : i64, tpu.core_type = #tpu.core_type<tc>} {
    %cst = arith.constant 0.000000e+00 : f32
    %0 = vector.broadcast %cst : f32 to vector<2x1x256xf32>
    %c0 = arith.constant 0 : index
    %c0_0 = arith.constant 0 : index
    %c0_1 = arith.constant 0 : index
    %1 = vector.load %arg10[%c0, %c0_0, %c0_1] : memref<2x18x256xf32, #tpu.memory_space<vmem>>, vector<2x1x256xf32>
    tpu.vector_store %arg10[%c0, %c0_0, %c0_1], %0 {strides = array<i32>} : memref<2x18x256xf32, #tpu.memory_space<vmem>>, vector<2x1x256xf32>,
    %cst_2 = arith.constant 0.000000e+00 : f32
    %2 = vector.broadcast %cst_2 : f32 to vector<2x1x256xf32>
    %c0_3 = arith.constant 0 : index
    %c17 = arith.constant 17 : index
    %c0_4 = arith.constant 0 : index
    %3 = vector.load %arg10[%c0_3, %c17, %c0_4] : memref<2x18x256xf32, #tpu.memory_space<vmem>>, vector<2x1x256xf32>
    tpu.vector_store %arg10[%c0_3, %c17, %c0_4], %2 {strides = array<i32>} : memref<2x18x256xf32, #tpu.memory_space<vmem>>, vector<2x1x256xf32>,
    %c0_5 = arith.constant 0 : index
    %c0_6 = arith.constant 0 : index
    %c0_7 = arith.constant 0 : index
    %4 = vector.load %arg0[%c0_5, %c0_6, %c0_7] : memref<2x16x256xf32, #tpu.memory_space<vmem>>, vector<2x16x256xf32>
    %c0_8 = arith.constant 0 : index
    %c1 = arith.constant 1 : index
    %c0_9 = arith.constant 0 : index
    %5 = vector.load %arg10[%c0_8, %c1, %c0_9] : memref<2x18x256xf32, #tpu.memory_space<vmem>>, vector<2x16x256xf32>
    tpu.vector_store %arg10[%c0_8, %c1, %c0_9], %4 {strides = array<i32>} : memref<2x18x256xf32, #tpu.memory_space<vmem>>, vector<2x16x256xf32>,
    %c0_10 = arith.constant 0 : index
    %c0_11 = arith.constant 0 : index
    %c0_12 = arith.constant 0 : index
    %6 = vector.load %arg10[%c0_10, %c0_11, %c0_12] : memref<2x18x256xf32, #tpu.memory_space<vmem>>, vector<2x16x256xf32>
    %c0_13 = arith.constant 0 : index
    %c1_14 = arith.constant 1 : index
    %c0_15 = arith.constant 0 : index
    %7 = vector.load %arg10[%c0_13, %c1_14, %c0_15] : memref<2x18x256xf32, #tpu.memory_space<vmem>>, vector<2x16x256xf32>
    %c0_16 = arith.constant 0 : index
    %c2 = arith.constant 2 : index
    %c0_17 = arith.constant 0 : index
    %8 = vector.load %arg10[%c0_16, %c2, %c0_17] : memref<2x18x256xf32, #tpu.memory_space<vmem>>, vector<2x16x256xf32>
    %9 = tpu.concatenate %6, %7, %8 in 2 : vector<2x16x256xf32>, vector<2x16x256xf32>, vector<2x16x256xf32> -> vector<2x16x768xf32>
    %10 = vector.shape_cast %9 : vector<2x16x768xf32> to vector<32x768xf32>
    %c0_18 = arith.constant 0 : index
    %c0_19 = arith.constant 0 : index
    %11 = vector.load %arg1[%c0_18, %c0_19] : memref<768x256xf32, #tpu.memory_space<vmem>>, vector<768x256xf32>
    %cst_20 = arith.constant dense<0.000000e+00> : vector<32x256xf32>
    %12 = tpu.matmul %10, %11, %cst_20 {dimension_numbers = #tpu.dot_dimension_numbers<[1], [0], [0], [1], [0, 0, 1, 1], [], []>} : vector<32x768xf32>, vector<768x256xf32>, vector<32x256xf32> -> vector<32x256xf32>
    %cst_21 = arith.constant dense<0.000000e+00> : vector<256xf32>
    %13 = vector.multi_reduction <add>, %12, %cst_21 [0] : vector<32x256xf32> to vector<256xf32>
    %14 = vector.shape_cast %13 : vector<256xf32> to vector<1x256xf32>
    %15 = arith.mulf %12, %12 : vector<32x256xf32>
    %cst_22 = arith.constant dense<0.000000e+00> : vector<256xf32>
    %16 = vector.multi_reduction <add>, %15, %cst_22 [0] : vector<32x256xf32> to vector<256xf32>
    %17 = vector.shape_cast %16 : vector<256xf32> to vector<1x256xf32>
    %c0_23 = arith.constant 0 : index
    %c0_24 = arith.constant 0 : index
    %18 = vector.load %arg7[%c0_23, %c0_24] : memref<256x16xf32, #tpu.memory_space<vmem>>, vector<256x16xf32>
    %cst_25 = arith.constant dense<0.000000e+00> : vector<1x16xf32>
    %19 = tpu.matmul %14, %18, %cst_25 {dimension_numbers = #tpu.dot_dimension_numbers<[1], [0], [0], [1], [0, 0, 1, 1], [], []>} : vector<1x256xf32>, vector<256x16xf32>, vector<1x16xf32> -> vector<1x16xf32>
    %c0_26 = arith.constant 0 : index
    %c0_27 = arith.constant 0 : index
    %20 = vector.load %arg7[%c0_26, %c0_27] : memref<256x16xf32, #tpu.memory_space<vmem>>, vector<256x16xf32>
    %cst_28 = arith.constant dense<0.000000e+00> : vector<1x16xf32>
    %21 = tpu.matmul %17, %20, %cst_28 {dimension_numbers = #tpu.dot_dimension_numbers<[1], [0], [0], [1], [0, 0, 1, 1], [], []>} : vector<1x256xf32>, vector<256x16xf32>, vector<1x16xf32> -> vector<1x16xf32>
    %cst_29 = arith.constant 0.001953125 : f32
    %22 = vector.broadcast %cst_29 : f32 to vector<1x16xf32>
    %23 = arith.mulf %19, %22 : vector<1x16xf32>
    %cst_30 = arith.constant 0.001953125 : f32
    %24 = vector.broadcast %cst_30 : f32 to vector<1x16xf32>
    %25 = arith.mulf %21, %24 : vector<1x16xf32>
    %26 = arith.mulf %23, %23 : vector<1x16xf32>
    %27 = arith.subf %25, %26 : vector<1x16xf32>
    %c0_31 = arith.constant 0 : index
    %c0_32 = arith.constant 0 : index
    %28 = vector.load %arg3[%c0_31, %c0_32] : memref<1x16xf32, #tpu.memory_space<vmem>>, vector<1x16xf32>
    %cst_33 = arith.constant 9.99999974E-6 : f32
    %29 = vector.broadcast %cst_33 : f32 to vector<1x16xf32>
    %30 = arith.addf %27, %29 : vector<1x16xf32>
    %31 = math.rsqrt %30 : vector<1x16xf32>
    %32 = arith.mulf %28, %31 : vector<1x16xf32>
    %c0_34 = arith.constant 0 : index
    %c0_35 = arith.constant 0 : index
    %33 = vector.load %arg4[%c0_34, %c0_35] : memref<1x16xf32, #tpu.memory_space<vmem>>, vector<1x16xf32>
    %34 = arith.mulf %23, %32 : vector<1x16xf32>
    %35 = arith.subf %33, %34 : vector<1x16xf32>
    %c0_36 = arith.constant 0 : index
    %c0_37 = arith.constant 0 : index
    %36 = vector.load %arg8[%c0_36, %c0_37] : memref<16x256xf32, #tpu.memory_space<vmem>>, vector<16x256xf32>
    %cst_38 = arith.constant dense<0.000000e+00> : vector<1x256xf32>
    %37 = tpu.matmul %32, %36, %cst_38 {dimension_numbers = #tpu.dot_dimension_numbers<[1], [0], [0], [1], [0, 0, 1, 1], [], []>} : vector<1x16xf32>, vector<16x256xf32>, vector<1x256xf32> -> vector<1x256xf32>
    %c0_39 = arith.constant 0 : index
    %c0_40 = arith.constant 0 : index
    %38 = vector.load %arg8[%c0_39, %c0_40] : memref<16x256xf32, #tpu.memory_space<vmem>>, vector<16x256xf32>
    %cst_41 = arith.constant dense<0.000000e+00> : vector<1x256xf32>
    %39 = tpu.matmul %35, %38, %cst_41 {dimension_numbers = #tpu.dot_dimension_numbers<[1], [0], [0], [1], [0, 0, 1, 1], [], []>} : vector<1x16xf32>, vector<16x256xf32>, vector<1x256xf32> -> vector<1x256xf32>
    %40 = vector.broadcast %37 : vector<1x256xf32> to vector<32x256xf32>
    %41 = arith.mulf %12, %40 : vector<32x256xf32>
    %42 = vector.broadcast %39 : vector<1x256xf32> to vector<32x256xf32>
    %43 = arith.addf %41, %42 : vector<32x256xf32>
    %cst_42 = arith.constant 0.000000e+00 : f32
    %44 = vector.broadcast %cst_42 : f32 to vector<32x256xf32>
    %45 = arith.cmpf ogt, %43, %44 : vector<32x256xf32>
    %cst_43 = arith.constant 2.000000e-01 : f32
    %46 = vector.broadcast %cst_43 : f32 to vector<32x256xf32>
    %47 = arith.mulf %46, %43 : vector<32x256xf32>
    %48 = arith.select %45, %43, %47 : vector<32x256xi1>, vector<32x256xf32>
    %49 = vector.shape_cast %48 : vector<32x256xf32> to vector<2x16x256xf32>
    %c0_44 = arith.constant 0 : index
    %c1_45 = arith.constant 1 : index
    %c0_46 = arith.constant 0 : index
    %50 = vector.load %arg10[%c0_44, %c1_45, %c0_46] : memref<2x18x256xf32, #tpu.memory_space<vmem>>, vector<2x16x256xf32>
    tpu.vector_store %arg10[%c0_44, %c1_45, %c0_46], %49 {strides = array<i32>} : memref<2x18x256xf32, #tpu.memory_space<vmem>>, vector<2x16x256xf32>,
    %c0_47 = arith.constant 0 : index
    %c0_48 = arith.constant 0 : index
    %c0_49 = arith.constant 0 : index
    %51 = vector.load %arg10[%c0_47, %c0_48, %c0_49] : memref<2x18x256xf32, #tpu.memory_space<vmem>>, vector<2x16x256xf32>
    %c0_50 = arith.constant 0 : index
    %c1_51 = arith.constant 1 : index
    %c0_52 = arith.constant 0 : index
    %52 = vector.load %arg10[%c0_50, %c1_51, %c0_52] : memref<2x18x256xf32, #tpu.memory_space<vmem>>, vector<2x16x256xf32>
    %c0_53 = arith.constant 0 : index
    %c2_54 = arith.constant 2 : index
    %c0_55 = arith.constant 0 : index
    %53 = vector.load %arg10[%c0_53, %c2_54, %c0_55] : memref<2x18x256xf32, #tpu.memory_space<vmem>>, vector<2x16x256xf32>
    %54 = tpu.concatenate %51, %52, %53 in 2 : vector<2x16x256xf32>, vector<2x16x256xf32>, vector<2x16x256xf32> -> vector<2x16x768xf32>
    %55 = vector.shape_cast %54 : vector<2x16x768xf32> to vector<32x768xf32>
    %c0_56 = arith.constant 0 : index
    %c0_57 = arith.constant 0 : index
    %56 = vector.load %arg2[%c0_56, %c0_57] : memref<768x256xf32, #tpu.memory_space<vmem>>, vector<768x256xf32>
    %cst_58 = arith.constant dense<0.000000e+00> : vector<32x256xf32>
    %57 = tpu.matmul %55, %56, %cst_58 {dimension_numbers = #tpu.dot_dimension_numbers<[1], [0], [0], [1], [0, 0, 1, 1], [], []>} : vector<32x768xf32>, vector<768x256xf32>, vector<32x256xf32> -> vector<32x256xf32>
    %cst_59 = arith.constant dense<0.000000e+00> : vector<256xf32>
    %58 = vector.multi_reduction <add>, %57, %cst_59 [0] : vector<32x256xf32> to vector<256xf32>
    %59 = vector.shape_cast %58 : vector<256xf32> to vector<1x256xf32>
    %60 = arith.mulf %57, %57 : vector<32x256xf32>
    %cst_60 = arith.constant dense<0.000000e+00> : vector<256xf32>
    %61 = vector.multi_reduction <add>, %60, %cst_60 [0] : vector<32x256xf32> to vector<256xf32>
    %62 = vector.shape_cast %61 : vector<256xf32> to vector<1x256xf32>
    %c0_61 = arith.constant 0 : index
    %c0_62 = arith.constant 0 : index
    %63 = vector.load %arg7[%c0_61, %c0_62] : memref<256x16xf32, #tpu.memory_space<vmem>>, vector<256x16xf32>
    %cst_63 = arith.constant dense<0.000000e+00> : vector<1x16xf32>
    %64 = tpu.matmul %59, %63, %cst_63 {dimension_numbers = #tpu.dot_dimension_numbers<[1], [0], [0], [1], [0, 0, 1, 1], [], []>} : vector<1x256xf32>, vector<256x16xf32>, vector<1x16xf32> -> vector<1x16xf32>
    %c0_64 = arith.constant 0 : index
    %c0_65 = arith.constant 0 : index
    %65 = vector.load %arg7[%c0_64, %c0_65] : memref<256x16xf32, #tpu.memory_space<vmem>>, vector<256x16xf32>
    %cst_66 = arith.constant dense<0.000000e+00> : vector<1x16xf32>
    %66 = tpu.matmul %62, %65, %cst_66 {dimension_numbers = #tpu.dot_dimension_numbers<[1], [0], [0], [1], [0, 0, 1, 1], [], []>} : vector<1x256xf32>, vector<256x16xf32>, vector<1x16xf32> -> vector<1x16xf32>
    %cst_67 = arith.constant 0.001953125 : f32
    %67 = vector.broadcast %cst_67 : f32 to vector<1x16xf32>
    %68 = arith.mulf %64, %67 : vector<1x16xf32>
    %cst_68 = arith.constant 0.001953125 : f32
    %69 = vector.broadcast %cst_68 : f32 to vector<1x16xf32>
    %70 = arith.mulf %66, %69 : vector<1x16xf32>
    %71 = arith.mulf %68, %68 : vector<1x16xf32>
    %72 = arith.subf %70, %71 : vector<1x16xf32>
    %c0_69 = arith.constant 0 : index
    %c0_70 = arith.constant 0 : index
    %73 = vector.load %arg5[%c0_69, %c0_70] : memref<1x16xf32, #tpu.memory_space<vmem>>, vector<1x16xf32>
    %cst_71 = arith.constant 9.99999974E-6 : f32
    %74 = vector.broadcast %cst_71 : f32 to vector<1x16xf32>
    %75 = arith.addf %72, %74 : vector<1x16xf32>
    %76 = math.rsqrt %75 : vector<1x16xf32>
    %77 = arith.mulf %73, %76 : vector<1x16xf32>
    %c0_72 = arith.constant 0 : index
    %c0_73 = arith.constant 0 : index
    %78 = vector.load %arg6[%c0_72, %c0_73] : memref<1x16xf32, #tpu.memory_space<vmem>>, vector<1x16xf32>
    %79 = arith.mulf %68, %77 : vector<1x16xf32>
    %80 = arith.subf %78, %79 : vector<1x16xf32>
    %c0_74 = arith.constant 0 : index
    %c0_75 = arith.constant 0 : index
    %81 = vector.load %arg8[%c0_74, %c0_75] : memref<16x256xf32, #tpu.memory_space<vmem>>, vector<16x256xf32>
    %cst_76 = arith.constant dense<0.000000e+00> : vector<1x256xf32>
    %82 = tpu.matmul %77, %81, %cst_76 {dimension_numbers = #tpu.dot_dimension_numbers<[1], [0], [0], [1], [0, 0, 1, 1], [], []>} : vector<1x16xf32>, vector<16x256xf32>, vector<1x256xf32> -> vector<1x256xf32>
    %c0_77 = arith.constant 0 : index
    %c0_78 = arith.constant 0 : index
    %83 = vector.load %arg8[%c0_77, %c0_78] : memref<16x256xf32, #tpu.memory_space<vmem>>, vector<16x256xf32>
    %cst_79 = arith.constant dense<0.000000e+00> : vector<1x256xf32>
    %84 = tpu.matmul %80, %83, %cst_79 {dimension_numbers = #tpu.dot_dimension_numbers<[1], [0], [0], [1], [0, 0, 1, 1], [], []>} : vector<1x16xf32>, vector<16x256xf32>, vector<1x256xf32> -> vector<1x256xf32>
    %85 = vector.broadcast %82 : vector<1x256xf32> to vector<32x256xf32>
    %86 = arith.mulf %57, %85 : vector<32x256xf32>
    %87 = vector.broadcast %84 : vector<1x256xf32> to vector<32x256xf32>
    %88 = arith.addf %86, %87 : vector<32x256xf32>
    %89 = vector.shape_cast %88 : vector<32x256xf32> to vector<2x16x256xf32>
    %90 = arith.addf %89, %4 : vector<2x16x256xf32>
    %c0_80 = arith.constant 0 : index
    %c0_81 = arith.constant 0 : index
    %c0_82 = arith.constant 0 : index
    %91 = vector.load %arg9[%c0_80, %c0_81, %c0_82] : memref<2x16x256xf32, #tpu.memory_space<vmem>>, vector<2x16x256xf32>
    tpu.vector_store %arg9[%c0_80, %c0_81, %c0_82], %90 {strides = array<i32>} : memref<2x16x256xf32, #tpu.memory_space<vmem>>, vector<2x16x256xf32>,
    return
  }
}

</mosaic_0001>

<bundles_post_ra>
// kernel: tpu_custom_call.1
= control target key start
LH: loop header
LB: loop body
LE: loop exit
PB: predicated region body
PF: predicated region fallthrough
CT: control target
= control target key end

     0   :  { %14 = vsyncpa [#allocation4], 0  ;;  %s3748_s0 = inlined_call_operand.vmem [shape: f32[2,16,256], index: 0, kind: input, shape index: {}]   ;;  %s3749_s1 = inlined_call_operand.hbm [shape: f32[768,256], index: 1, kind: input, shape index: {}]   ;;  %s3750_s2 = inlined_call_operand.hbm [shape: f32[768,256], index: 2, kind: input, shape index: {}]   ;;  %s3751_s3 = inlined_call_operand.vmem [shape: f32[1,16], index: 3, kind: input, shape index: {}]   ;;  %s3752_s4 = inlined_call_operand.vmem [shape: f32[1,16], index: 4, kind: input, shape index: {}]   ;;  %s3753_s5 = inlined_call_operand.vmem [shape: f32[1,16], index: 5, kind: input, shape index: {}]   ;;  %s3754_s6 = inlined_call_operand.vmem [shape: f32[1,16], index: 6, kind: input, shape index: {}]   ;;  %s3755_s7 = inlined_call_operand.vmem [shape: f32[256,16], index: 7, kind: input, shape index: {}]   ;;  %s3756_s8 = inlined_call_operand.vmem [shape: f32[16,256], index: 8, kind: input, shape index: {}]   ;;  %s3757_s9 = inlined_call_operand.hbm [shape: f32[2,16,256], index: 9, kind: output, shape index: {}]  }
   0x1   :  { %15 = vsyncpa [#allocation7], 0 }
   0x2   :  { %16 = vsyncpa [#allocation5], 0  ;;  %s2968_s30 = smov [#allocation3]   ;;  %s2896_s13 = scalar_lea.hbm %s3749_s1, 24576 }
   0x3   :  { %s24_s10 = sshll.u32 %s2968_s30, 4  ;;  %p2897_p0 = scmp.ne.s32.totalorder %s3749_s1, %s2896_s13  ;;  %s25_s10 = int_to_ptr.vmem [resolvable:$true] %s24_s10 }
   0x4   :  { %p2900_p1 = scmp.lt.u32.totalorder %s2896_s13, %s3749_s1 }
   0x6   :  { %p2902_p2 = pnand %p2900_p1, %p2897_p0 }
   0x8   :  { %2905 = shalt.err (!%p2902_p2)
}
   0x9   :  { %s2906_s18 = scalar_lea.vmem %s25_s10, 24576  ;;  %p2911_p4 = scmp.lt.s32.totalorder %s25_s10, %s25_s10 }
   0xa   :  { %p2907_p3 = scmp.ne.s32.totalorder %s25_s10, %s2906_s18  ;;  %p2912_p5 = scmp.lt.s32.totalorder %s2906_s18, %s2906_s18 }
   0xc   :  { %p2913_p6 = por %p2912_p5, %p2911_p4 }
   0xe   :  { %p2914_p7 = pnand %p2913_p6, %p2907_p3 }
  0x10   :  { %2917 = shalt.err (!%p2914_p7)
}
  0x11   :  { %s2969_s19 = smov 256   ;;  %s2970_s20 = smov 16  }
  0x12   :  { %30 = dma.hbm_to_vmem [thread:$0]  %s3749_s1, 24576, %s25_s10, [#allocation4], %s2969_s19, %s2969_s19, %s2970_s20  }
  0x13   :  { %s2971_s23 = smov [#allocation6]   ;;  %s2918_s27 = scalar_lea.hbm %s3750_s2, 24576 }
  0x14   :  { %s36_s24 = sshll.u32 %s2971_s23, 4  ;;  %p2919_p8 = scmp.ne.s32.totalorder %s3750_s2, %s2918_s27  ;;  %s37_s24 = int_to_ptr.vmem [resolvable:$true] %s36_s24 }
  0x15   :  { %p2922_p9 = scmp.lt.u32.totalorder %s2918_s27, %s3750_s2 }
  0x17   :  { %p2924_p10 = pnand %p2922_p9, %p2919_p8 }
  0x19   :  { %2927 = shalt.err (!%p2924_p10)
}
  0x1a   :  { %s2928_s12 = scalar_lea.vmem %s37_s24, 24576  ;;  %p2933_p12 = scmp.lt.s32.totalorder %s37_s24, %s37_s24 }
  0x1b   :  { %p2929_p11 = scmp.ne.s32.totalorder %s37_s24, %s2928_s12  ;;  %p2934_p13 = scmp.lt.s32.totalorder %s2928_s12, %s2928_s12 }
  0x1d   :  { %p2935_p0 = por %p2934_p13, %p2933_p12 }
  0x1f   :  { %p2936_p1 = pnand %p2935_p0, %p2929_p11 }
  0x21   :  { %2939 = shalt.err (!%p2936_p1)
}
  0x22   :  { %42 = dma.hbm_to_vmem [thread:$0]  %s3750_s2, 24576, %s37_s24, [#allocation7], %s2969_s19, %s2969_s19, %s2970_s20  }
  0x23   :  { %2962 = dma.done.wait [#allocation4], 24576  }
  0x24   :  { %2963 = vsyncadd [#allocation4], 4294942720 }
  0x25   :  { %2964 = dma.done.wait [#allocation7], 24576  }
  0x26   :  { %2965 = vsyncadd [#allocation7], 4294942720  ;;  %v61_v0 = vlaneseq  ;;  %v2972_v1 = vmov 0.0   ;;  %v232_v2 = vld [vmem:[#allocation3 + $0x8] sm:$0xff]  ;;  %v234_v3 = vld [vmem:[#allocation3 + $0x18] sm:$0xff]  ;;  %vm92_vm1 = vcmask 1040384  }
  0x27   :  { %v231_v4 = vld [vmem:[#allocation3] sm:$0xff]  ;;  %v2318_v5 = vpack.c.bf16 %v234_v3, %v232_v2  ;;  %v233_v6 = vld [vmem:[#allocation3 + $0x10] sm:$0xff]  ;;  %v236_v7 = vld [vmem:[#allocation3 + $0x28] sm:$0xff]  ;;  %vm165_vm2 = vcmask 1046528   ;;  %vm202_vm3 = vcmask 1045504   ;;  %vm921_vm4 = vcmask 130048  }
  0x28   :  { %vm63_vm0 = vcmp.lt.s32.totalorder %v61_v0, 256  ;;  %v238_v8 = vld [vmem:[#allocation3 + $0x38] sm:$0xff]  ;;  %v2320_v9 = vpack.c.bf16 %v233_v6, %v231_v4  ;;  %v235_v11 = vld [vmem:[#allocation3 + $0x20] sm:$0xff]  ;;  %v237_v12 = vld [vmem:[#allocation3 + $0x30] sm:$0xff] }
  0x29   :  { %65 = vst.msk [vmem:[#allocation2] ss:$8 sm:$0x3] %vm63_vm0, %v2972_v1  ;;  %68 = vst.msk [vmem:[#allocation2 + $0x30] ss:$8 sm:$0x3] %vm63_vm0, %v2972_v1  ;;  %v2322_v10 = vpack.c.bf16 %v238_v8, %v236_v7  ;;  %2319 = vmatprep.subr.bf16.mxu0 %v2318_v5  ;;  %v2324_v15 = vpack.c.bf16 %v237_v12, %v235_v11 }
  0x2a   :  { %71 = vst.msk [vmem:[#allocation2 + $0x21] ss:$8 sm:$0x3] %vm63_vm0, %v2972_v1  ;;  %74 = vst.msk [vmem:[#allocation2 + $0x51] ss:$8 sm:$0x3] %vm63_vm0, %v2972_v1  ;;  %2321 = vmatpush1.bf16.msra.mxu0 %v2320_v9 }
  0x2b   :  { %v240_v13 = vld [vmem:[#allocation3 + $0x48] sm:$0xff]  ;;  %v242_v14 = vld [vmem:[#allocation3 + $0x58] sm:$0xff]  ;;  %2323 = vmatprep.subr.bf16.mxu0 %v2322_v10  ;;  %v239_v17 = vld [vmem:[#allocation3 + $0x40] sm:$0xff] }
  0x2c   :  { %v2326_v16 = vpack.c.bf16 %v242_v14, %v240_v13  ;;  %v241_v18 = vld [vmem:[#allocation3 + $0x50] sm:$0xff]  ;;  %v244_v19 = vld [vmem:[#allocation3 + $0x68] sm:$0xff]  ;;  %v246_v20 = vld [vmem:[#allocation3 + $0x78] sm:$0xff] }
  0x2d   :  { %v2328_v21 = vpack.c.bf16 %v241_v18, %v239_v17  ;;  %v2330_v22 = vpack.c.bf16 %v246_v20, %v244_v19  ;;  %v243_v23 = vld [vmem:[#allocation3 + $0x60] sm:$0xff]  ;;  %v245_v24 = vld [vmem:[#allocation3 + $0x70] sm:$0xff]  ;;  %v248_v25 = vld [vmem:[#allocation3 + $0x88] sm:$0xff] }
  0x2e   :  { %2325 = vmatpush1.bf16.msra.mxu0 %v2324_v15  ;;  %v250_v26 = vld [vmem:[#allocation3 + $0x98] sm:$0xff]  ;;  %v2332_v27 = vpack.c.bf16 %v245_v24, %v243_v23  ;;  %v247_v29 = vld [vmem:[#allocation3 + $0x80] sm:$0xff]  ;;  %v249_v30 = vld [vmem:[#allocation3 + $0x90] sm:$0xff] }
  0x2f   :  { %2327 = vmatprep.subr.bf16.mxu0 %v2326_v16  ;;  %v2334_v28 = vpack.c.bf16 %v250_v26, %v248_v25  ;;  %v252_v31 = vld [vmem:[#allocation3 + $0xa8] sm:$0xff]  ;;  %v254_v32 = vld [vmem:[#allocation3 + $0xb8] sm:$0xff]  ;;  %v2336_v33 = vpack.c.bf16 %v249_v30, %v247_v29  ;;  %v251_v35 = vld [vmem:[#allocation3 + $0xa0] sm:$0xff] }
  0x30   :  { %v2338_v34 = vpack.c.bf16 %v254_v32, %v252_v31  ;;  %v253_v36 = vld [vmem:[#allocation3 + $0xb0] sm:$0xff]  ;;  %v256_v37 = vld [vmem:[#allocation3 + $0xc8] sm:$0xff]  ;;  %v258_v38 = vld [vmem:[#allocation3 + $0xd8] sm:$0xff] }
  0x31   :  { %v2340_v39 = vpack.c.bf16 %v253_v36, %v251_v35  ;;  %v2342_v40 = vpack.c.bf16 %v258_v38, %v256_v37  ;;  %v255_v41 = vld [vmem:[#allocation3 + $0xc0] sm:$0xff]  ;;  %v257_v42 = vld [vmem:[#allocation3 + $0xd0] sm:$0xff]  ;;  %v3062_v43 = vld [vmem:[%s3748_s0 + $0x8] sm:$0xff] }
  0x32   :  { %2329 = vmatpush1.bf16.msra.mxu0 %v2328_v21  ;;  %v260_v44 = vld [vmem:[#allocation3 + $0xe8] sm:$0xff]  ;;  %v262_v45 = vld [vmem:[#allocation3 + $0xf8] sm:$0xff]  ;;  %v94_v46 = vrot.slane %v3062_v43, 7  ;;  %v3068_v47 = vld [vmem:[%s3748_s0] sm:$0xff]  ;;  %v2344_v49 = vpack.c.bf16 %v257_v42, %v255_v41 }
  0x33   :  { %2331 = vmatprep.subr.bf16.mxu0 %v2330_v22  ;;  %v93_v48 = vrot.slane %v3068_v47, 7  ;;  %v2346_v50 = vpack.c.bf16 %v262_v45, %v260_v44  ;;  %v259_v51 = vld [vmem:[#allocation3 + $0xe0] sm:$0xff]  ;;  %v261_v52 = vld [vmem:[#allocation3 + $0xf0] sm:$0xff]  ;;  %v264_v53 = vld [vmem:[#allocation3 + $0x108] sm:$0xff] }
  0x34   :  { %118 = vst [vmem:[#allocation2 + $0x8] sm:$0xfe] %v94_v46  ;;  %v266_v54 = vld [vmem:[#allocation3 + $0x118] sm:$0xff]  ;;  %v2348_v55 = vpack.c.bf16 %v261_v52, %v259_v51  ;;  %v263_v57 = vld [vmem:[#allocation3 + $0x100] sm:$0xff]  ;;  %v265_v58 = vld [vmem:[#allocation3 + $0x110] sm:$0xff] }
  0x35   :  { %117 = vst [vmem:[#allocation2] sm:$0xfe] %v93_v48  ;;  %v2350_v56 = vpack.c.bf16 %v266_v54, %v264_v53  ;;  %v268_v59 = vld [vmem:[#allocation3 + $0x128] sm:$0xff]  ;;  %v270_v60 = vld [vmem:[#allocation3 + $0x138] sm:$0xff]  ;;  %v2352_v62 = vpack.c.bf16 %v265_v58, %v263_v57  ;;  %v267_v2 = vld [vmem:[#allocation3 + $0x120] sm:$0xff] }
  0x36   :  { %2333 = vmatpush1.bf16.msra.mxu0 %v2332_v27  ;;  %v2354_v63 = vpack.c.bf16 %v270_v60, %v268_v59  ;;  %v269_v3 = vld [vmem:[#allocation3 + $0x130] sm:$0xff]  ;;  %v272_v4 = vld [vmem:[#allocation3 + $0x148] sm:$0xff]  ;;  %v274_v5 = vld [vmem:[#allocation3 + $0x158] sm:$0xff] }
  0x37   :  { %2335 = vmatprep.subr.bf16.mxu0 %v2334_v28  ;;  %v2356_v6 = vpack.c.bf16 %v269_v3, %v267_v2  ;;  %v2358_v7 = vpack.c.bf16 %v274_v5, %v272_v4  ;;  %v271_v8 = vld [vmem:[#allocation3 + $0x140] sm:$0xff]  ;;  %v273_v9 = vld [vmem:[#allocation3 + $0x150] sm:$0xff]  ;;  %v276_v10 = vld [vmem:[#allocation3 + $0x168] sm:$0xff] }
  0x38   :  { %v278_v11 = vld [vmem:[#allocation3 + $0x178] sm:$0xff]  ;;  %v2360_v12 = vpack.c.bf16 %v273_v9, %v271_v8  ;;  %v275_v15 = vld [vmem:[#allocation3 + $0x160] sm:$0xff]  ;;  %v277_v16 = vld [vmem:[#allocation3 + $0x170] sm:$0xff] }
  0x39   :  { %v3078_v13 = vld [vmem:[%s3748_s0 + $0x18] sm:$0xff]  ;;  %v2362_v14 = vpack.c.bf16 %v278_v11, %v276_v10  ;;  %v3084_v18 = vld [vmem:[%s3748_s0 + $0x10] sm:$0xff]  ;;  %v280_v19 = vld [vmem:[#allocation3 + $0x188] sm:$0xff]  ;;  %v2364_v25 = vpack.c.bf16 %v277_v16, %v275_v15 }
  0x3a   :  { %2337 = vmatpush1.bf16.msra.mxu0 %v2336_v33  ;;  %v97_v17 = vrot.slane %v3078_v13, 7  ;;  %v282_v20 = vld [vmem:[#allocation3 + $0x198] sm:$0xff]  ;;  %v95_v21 = vrot.slane %v3084_v18, 7  ;;  %v3090_v22 = vld [vmem:[%s3748_s0 + $0x28] sm:$0xff]  ;;  %v3098_v24 = vld [vmem:[%s3748_s0 + $0x20] sm:$0xff] }
  0x3b   :  { %2339 = vmatprep.subr.bf16.mxu0 %v2338_v34  ;;  %v130_v61 = vld [vmem:[#allocation2 + $0x8] sm:$0xff]  ;;  %v100_v23 = vrot.slane %v3090_v22, 7  ;;  %v99_v26 = vrot.slane %v3098_v24, 7  ;;  %v3106_v27 = vld [vmem:[%s3748_s0 + $0x38] sm:$0xff]  ;;  %v2366_v28 = vpack.c.bf16 %v282_v20, %v280_v19  ;;  %v279_v29 = vld [vmem:[#allocation3 + $0x180] sm:$0xff] }
  0x3c   :  { %487 = vmatprep.mubr.f32.mxu0 %v130_v61  ;;  %122 = vst [vmem:[#allocation2 + $0x28] sm:$0x1] %v97_v17  ;;  %121 = vst [vmem:[#allocation2 + $0x20] sm:$0x1] %v95_v21  ;;  %v281_v30 = vld [vmem:[#allocation3 + $0x190] sm:$0xff]  ;;  %v103_v31 = vrot.slane %v3106_v27, 7  ;;  %v3136_v11 = vsel %vm92_vm1, %v93_v48, %v95_v21 }
  0x3d   :  { %124 = vst [vmem:[#allocation2 + $0x38] sm:$0xfe] %v100_v23  ;;  %v3114_v32 = vld [vmem:[%s3748_s0 + $0x30] sm:$0xff]  ;;  %v284_v33 = vld [vmem:[#allocation3 + $0x1a8] sm:$0xff]  ;;  %v286_v34 = vld [vmem:[#allocation3 + $0x1b8] sm:$0xff]  ;;  %v2368_v36 = vpack.c.bf16 %v281_v30, %v279_v29 }
  0x3e   :  { %2341 = vmatpush1.bf16.msra.mxu0 %v2340_v39  ;;  %123 = vst [vmem:[#allocation2 + $0x30] sm:$0xfe] %v99_v26  ;;  %v101_v35 = vrot.slane %v3114_v32, 7  ;;  %128 = vst [vmem:[#allocation2 + $0x58] sm:$0x1] %v103_v31  ;;  %v2370_v37 = vpack.c.bf16 %v286_v34, %v284_v33  ;;  %v283_v38 = vld [vmem:[#allocation3 + $0x1a0] sm:$0xff]  ;;  %v3144_v48 = vsel %vm92_vm1, %v100_v23, %v103_v31 }
  0x3f   :  { %2343 = vmatprep.subr.bf16.mxu0 %v2342_v40  ;;  %v285_v39 = vld [vmem:[#allocation3 + $0x1b0] sm:$0xff]  ;;  %v288_v40 = vld [vmem:[#allocation3 + $0x1c8] sm:$0xff]  ;;  %v290_v41 = vld [vmem:[#allocation3 + $0x1d8] sm:$0xff] }
  0x40   :  { %127 = vst [vmem:[#allocation2 + $0x50] sm:$0x1] %v101_v35  ;;  %v2372_v42 = vpack.c.bf16 %v285_v39, %v283_v38  ;;  %v2374_v44 = vpack.c.bf16 %v290_v41, %v288_v40  ;;  %v287_v45 = vld [vmem:[#allocation3 + $0x1c0] sm:$0xff]  ;;  %v294_v51 = vld [vmem:[#allocation3 + $0x1f8] sm:$0xff]  ;;  %v297_v61 = vld [vmem:[#allocation3 + $0x210] sm:$0xff]  ;;  %v3153_v22 = vsel %vm92_vm1, %v99_v26, %v101_v35 }
  0x41   :  { %v291_v54 = vld [vmem:[#allocation3 + $0x1e0] sm:$0xff]  ;;  %v298_v57 = vld [vmem:[#allocation3 + $0x218] sm:$0xff]  ;;  %v304_v8 = vld [vmem:[#allocation3 + $0x248] sm:$0xff] }
  0x42   :  { %2345 = vmatpush1.bf16.msra.mxu0 %v2344_v49  ;;  %v289_v49 = vld [vmem:[#allocation3 + $0x1d0] sm:$0xff]  ;;  %v295_v60 = vld [vmem:[#allocation3 + $0x200] sm:$0xff]  ;;  %v306_v9 = vld [vmem:[#allocation3 + $0x258] sm:$0xff] }
  0x43   :  { %2347 = vmatprep.subr.bf16.mxu0 %v2346_v50  ;;  %v292_v50 = vld [vmem:[#allocation3 + $0x1e8] sm:$0xff]  ;;  %v2376_v52 = vpack.c.bf16 %v289_v49, %v287_v45  ;;  %v129_v2 = vld [vmem:[#allocation2] sm:$0xff]  ;;  %v2384_v3 = vpack.c.bf16 %v297_v61, %v295_v60  ;;  %v305_v13 = vld [vmem:[#allocation3 + $0x250] sm:$0xff] }
  0x44   :  { %v2378_v53 = vpack.c.bf16 %v294_v51, %v292_v50  ;;  %v299_v5 = vld [vmem:[#allocation3 + $0x220] sm:$0xff]  ;;  %v310_v15 = vld [vmem:[#allocation3 + $0x278] sm:$0xff]  ;;  %v138_v16 = vld [vmem:[#allocation2 + $0x8] sm:$0xfe] }
  0x45   :  { %v303_v43 = vld [vmem:[#allocation3 + $0x240] sm:$0xff]  ;;  %v133_v19 = vld [vmem:[#allocation2 + $0x30] sm:$0xff]  ;;  %v169_v21 = vrot.slane %v138_v16, 1  ;;  %v314_v29 = vld [vmem:[#allocation3 + $0x298] sm:$0xff] }
  0x46   :  { %2349 = vmatpush1.bf16.msra.mxu0 %v2348_v55  ;;  %v293_v55 = vld [vmem:[#allocation3 + $0x1f0] sm:$0xff]  ;;  %v307_v47 = vld [vmem:[#allocation3 + $0x260] sm:$0xff]  ;;  %v316_v34 = vld [vmem:[#allocation3 + $0x2a8] sm:$0xff] }
  0x47   :  { %2351 = vmatprep.subr.bf16.mxu0 %v2350_v56  ;;  %v296_v56 = vld [vmem:[#allocation3 + $0x208] sm:$0xff]  ;;  %v2380_v58 = vpack.c.bf16 %v293_v55, %v291_v54  ;;  %v309_v20 = vld [vmem:[#allocation3 + $0x270] sm:$0xff]  ;;  %v311_v27 = vld [vmem:[#allocation3 + $0x280] sm:$0xff] }
  0x48   :  { %v2382_v59 = vpack.c.bf16 %v298_v57, %v296_v56  ;;  %v2396_v30 = vpack.c.bf16 %v309_v20, %v307_v47  ;;  %v313_v31 = vld [vmem:[#allocation3 + $0x290] sm:$0xff]  ;;  %v750_v32 = vld [vmem:[%s3755_s7 + $0x80] sm:$0xff]  ;;  %v751_v24 = vld [vmem:[%s3755_s7 + $0x88] sm:$0xff] }
  0x49   :  { %v734_v26 = vld [vmem:[%s3755_s7] sm:$0xff]  ;;  %v2400_v35 = vpack.c.bf16 %v313_v31, %v311_v27  ;;  %v735_v38 = vld [vmem:[%s3755_s7 + $0x8] sm:$0xff]  ;;  %v317_v41 = vld [vmem:[#allocation3 + $0x2b0] sm:$0xff] }
  0x4a   :  { %2353 = vmatpush1.bf16.msra.mxu0 %v2352_v62  ;;  %v300_v62 = vld [vmem:[#allocation3 + $0x228] sm:$0xff]  ;;  %v315_v40 = vld [vmem:[#allocation3 + $0x2a0] sm:$0xff]  ;;  %v322_v45 = vld [vmem:[#allocation3 + $0x2d8] sm:$0xff] }
  0x4b   :  { %2355 = vmatprep.subr.bf16.mxu0 %v2354_v63  ;;  %v302_v63 = vld [vmem:[#allocation3 + $0x238] sm:$0xff]  ;;  %v2404_v49 = vpack.c.bf16 %v317_v41, %v315_v40  ;;  %v319_v51 = vld [vmem:[#allocation3 + $0x2c0] sm:$0xff]  ;;  %v341_v47 = vld [vmem:[#allocation3 + $0x370] sm:$0xff] }
  0x4c   :  { %v2386_v4 = vpack.c.bf16 %v302_v63, %v300_v62  ;;  %v326_v54 = vld [vmem:[#allocation3 + $0x2f8] sm:$0xff]  ;;  %v323_v57 = vld [vmem:[#allocation3 + $0x2e0] sm:$0xff]  ;;  %v344_v20 = vld [vmem:[#allocation3 + $0x388] sm:$0xff] }
  0x4d   :  { %v330_v60 = vld [vmem:[#allocation3 + $0x318] sm:$0xff]  ;;  %v327_v63 = vld [vmem:[#allocation3 + $0x300] sm:$0xff]  ;;  %v348_v27 = vld [vmem:[#allocation3 + $0x3a8] sm:$0xff] }
  0x4e   :  { %2357 = vmatpush1.bf16.msra.mxu0 %v2356_v6  ;;  %v301_v6 = vld [vmem:[#allocation3 + $0x230] sm:$0xff]  ;;  %v342_v16 = vld [vmem:[#allocation3 + $0x378] sm:$0xff]  ;;  %v356_v41 = vld [vmem:[#allocation3 + $0x3e8] sm:$0xff] }
  0x4f   :  { %2359 = vmatprep.subr.bf16.mxu0 %v2358_v7  ;;  %v3128_v7 = vsel %vm92_vm1, %v94_v46, %v97_v17  ;;  %v2388_v10 = vpack.c.bf16 %v301_v6, %v299_v5  ;;  %v134_v46 = vld [vmem:[#allocation2 + $0x38] sm:$0xff]  ;;  %v2392_v17 = vpack.c.bf16 %v305_v13, %v303_v43  ;;  %v353_v40 = vld [vmem:[#allocation3 + $0x3d0] sm:$0xff] }
  0x50   :  { %v350_v31 = vld [vmem:[#allocation3 + $0x3b8] sm:$0xff] }
  0x52   :  { %2361 = vmatpush1.bf16.msra.mxu0 %v2360_v12  ;;  %v2390_v12 = vpack.c.bf16 %v306_v9, %v304_v8  ;;  %v331_v8 = vld [vmem:[#allocation3 + $0x320] sm:$0xff]  ;;  %v333_v9 = vld [vmem:[#allocation3 + $0x330] sm:$0xff] }
  0x53   :  { %2363 = vmatprep.subr.bf16.mxu0 %v2362_v14  ;;  %v308_v14 = vld [vmem:[#allocation3 + $0x268] sm:$0xff]  ;;  %v2420_v43 = vpack.c.bf16 %v333_v9, %v331_v8 }
  0x54   :  { %v2394_v18 = vpack.c.bf16 %v310_v15, %v308_v14  ;;  %v337_v14 = vld [vmem:[#allocation3 + $0x350] sm:$0xff]  ;;  %v340_v15 = vld [vmem:[#allocation3 + $0x368] sm:$0xff] }
  0x56   :  { %2365 = vmatpush1.bf16.msra.mxu0 %v2364_v25  ;;  %v170_v25 = vrot.slane %v3128_v7, 1 }
  0x57   :  { %2367 = vmatprep.subr.bf16.mxu0 %v2366_v28  ;;  %v312_v28 = vld [vmem:[#allocation3 + $0x288] sm:$0xff] }
  0x58   :  { %v2398_v23 = vpack.c.bf16 %v314_v29, %v312_v28  ;;  %v171_v33 = vsel %vm165_vm2, %v169_v21, %v170_v25  ;;  %v346_v21 = vld [vmem:[#allocation3 + $0x398] sm:$0xff] }
  0x59   :  { %v2430_v29 = vpack.c.bf16 %v346_v21, %v344_v20  ;;  %v177_v20 = vrot.slane %v3153_v22, 1 }
  0x5a   :  { %2369 = vmatpush1.bf16.msra.mxu0 %v2368_v36  ;;  %v318_v36 = vld [vmem:[#allocation3 + $0x2b8] sm:$0xff] }
  0x5b   :  { %2371 = vmatprep.subr.bf16.mxu0 %v2370_v37  ;;  %v3168_v37 = vpack.c.bf16 %v751_v24, %v750_v32  ;;  %v2402_v39 = vpack.c.bf16 %v318_v36, %v316_v34  ;;  %v2434_v34 = vpack.c.bf16 %v350_v31, %v348_v27  ;;  %v347_v36 = vld [vmem:[#allocation3 + $0x3a0] sm:$0xff]  ;;  %v349_v32 = vld [vmem:[#allocation3 + $0x3b0] sm:$0xff]  ;;  %v352_v24 = vld [vmem:[#allocation3 + $0x3c8] sm:$0xff] }
  0x5c   :  { %v372_v27 = vld [vmem:[#allocation3 + $0x468] sm:$0xff]  ;;  %v374_v31 = vld [vmem:[#allocation3 + $0x478] sm:$0xff] }
  0x5d   :  { %2511 = vmatprep.subr.bf16.mxu1 %v3168_v37 }
  0x5e   :  { %2373 = vmatpush1.bf16.msra.mxu0 %v2372_v42  ;;  %v3173_v42 = vpack.c.bf16 %v735_v38, %v734_v26  ;;  %v354_v26 = vld [vmem:[#allocation3 + $0x3d8] sm:$0xff] }
  0x5f   :  { %2375 = vmatprep.subr.bf16.mxu0 %v2374_v44  ;;  %v320_v44 = vld [vmem:[#allocation3 + $0x2c8] sm:$0xff]  ;;  %v2438_v38 = vpack.c.bf16 %v354_v26, %v352_v24  ;;  %v2458_v24 = vpack.c.bf16 %v374_v31, %v372_v27  ;;  %v371_v26 = vld [vmem:[#allocation3 + $0x460] sm:$0xff]  ;;  %v406_v31 = vld [vmem:[#allocation3 + $0x578] sm:$0xff] }
  0x60   :  { %2513 = vmatpush3.bf16.msra.mxu1 %v3173_v42  ;;  %v2406_v50 = vpack.c.bf16 %v322_v45, %v320_v44  ;;  %v358_v44 = vld [vmem:[#allocation3 + $0x3f8] sm:$0xff]  ;;  %v404_v27 = vld [vmem:[#allocation3 + $0x568] sm:$0xff] }
  0x62   :  { %2377 = vmatpush1.bf16.msra.mxu0 %v2376_v52  ;;  %v321_v52 = vld [vmem:[#allocation3 + $0x2d0] sm:$0xff] }
  0x63   :  { %2379 = vmatprep.subr.bf16.mxu0 %v2378_v53  ;;  %v324_v53 = vld [vmem:[#allocation3 + $0x2e8] sm:$0xff]  ;;  %v2408_v55 = vpack.c.bf16 %v321_v52, %v319_v51  ;;  %v357_v51 = vld [vmem:[#allocation3 + $0x3f0] sm:$0xff]  ;;  %v137_v52 = vld [vmem:[#allocation2] sm:$0xfe] }
  0x64   :  { %v2410_v56 = vpack.c.bf16 %v326_v54, %v324_v53  ;;  %v360_v53 = vld [vmem:[#allocation3 + $0x408] sm:$0xff]  ;;  %v362_v54 = vld [vmem:[#allocation3 + $0x418] sm:$0xff] }
  0x66   :  { %2381 = vmatpush1.bf16.msra.mxu0 %v2380_v58  ;;  %v325_v58 = vld [vmem:[#allocation3 + $0x2f0] sm:$0xff] }
  0x67   :  { %2383 = vmatprep.subr.bf16.mxu0 %v2382_v59  ;;  %v328_v59 = vld [vmem:[#allocation3 + $0x308] sm:$0xff]  ;;  %v2412_v61 = vpack.c.bf16 %v325_v58, %v323_v57  ;;  %v166_v58 = vrot.slane %v137_v52, 1  ;;  %v377_v52 = vld [vmem:[#allocation3 + $0x490] sm:$0xff] }
  0x68   :  { %v2414_v62 = vpack.c.bf16 %v330_v60, %v328_v59  ;;  %v2446_v59 = vpack.c.bf16 %v362_v54, %v360_v53  ;;  %v359_v60 = vld [vmem:[#allocation3 + $0x400] sm:$0xff]  ;;  %v380_v54 = vld [vmem:[#allocation3 + $0x4a8] sm:$0xff] }
  0x69   :  { %488 = vmatmul.mubr.f32.vlgmr.msra.gmra.mrb[0].mxu0 %v129_v2  ;;  %v329_v2 = vld [vmem:[#allocation3 + $0x310] sm:$0xff] }
  0x6a   :  { %2385 = vmatpush1.bf16.msra.mxu0 %v2384_v3  ;;  %493 = vmatprep.mubr.f32.mxu0 %v3128_v7  ;;  %v332_v3 = vld [vmem:[#allocation3 + $0x328] sm:$0xff]  ;;  %v2416_v5 = vpack.c.bf16 %v329_v2, %v327_v63  ;;  %v139_v63 = vld [vmem:[#allocation2 + $0x20] sm:$0x1] }
  0x6b   :  { %2387 = vmatprep.subr.bf16.mxu0 %v2386_v4  ;;  %v334_v4 = vld [vmem:[#allocation3 + $0x338] sm:$0xff]  ;;  %v364_v2 = vld [vmem:[#allocation3 + $0x428] sm:$0xff]  ;;  %v172_v8 = vrot.slane %v139_v63, 1 }
  0x6c   :  { %v2418_v6 = vpack.c.bf16 %v334_v4, %v332_v3  ;;  %v366_v3 = vld [vmem:[#allocation3 + $0x438] sm:$0xff] }
  0x6d   :  { %494 = vmatmul.mubr.f32.gmra.mrb[2].mxu0 %v3136_v11  ;;  %v142_v4 = vld [vmem:[#allocation2 + $0x38] sm:$0xfe]  ;;  %v2450_v9 = vpack.c.bf16 %v366_v3, %v364_v2  ;;  %v383_v2 = vld [vmem:[#allocation3 + $0x4c0] sm:$0xff]  ;;  %v385_v3 = vld [vmem:[#allocation3 + $0x4d0] sm:$0xff] }
  0x6e   :  { %2389 = vmatpush1.bf16.msra.mxu0 %v2388_v10  ;;  %499 = vmatprep.mubr.f32.mxu0 %v134_v46  ;;  %v336_v10 = vld [vmem:[#allocation3 + $0x348] sm:$0xff]  ;;  %v335_v46 = vld [vmem:[#allocation3 + $0x340] sm:$0xff] }
  0x6f   :  { %2391 = vmatprep.subr.bf16.mxu0 %v2390_v12  ;;  %v338_v12 = vld [vmem:[#allocation3 + $0x358] sm:$0xff] }
  0x70   :  { %v2422_v13 = vpack.c.bf16 %v338_v12, %v336_v10  ;;  %v363_v10 = vld [vmem:[#allocation3 + $0x420] sm:$0xff]  ;;  %v365_v12 = vld [vmem:[#allocation3 + $0x430] sm:$0xff] }
  0x71   :  { %500 = vmatmul.mubr.f32.gmra.mrb[4].mxu0 %v133_v19  ;;  %v2426_v19 = vpack.c.bf16 %v342_v16, %v340_v15  ;;  %v368_v15 = vld [vmem:[#allocation3 + $0x448] sm:$0xff]  ;;  %v370_v16 = vld [vmem:[#allocation3 + $0x458] sm:$0xff] }
  0x72   :  { %2393 = vmatpush1.bf16.msra.mxu0 %v2392_v17  ;;  %505 = vmatprep.mubr.f32.mxu0 %v3144_v48  ;;  %v2424_v17 = vpack.c.bf16 %v337_v14, %v335_v46  ;;  %v180_v46 = vrot.slane %v3144_v48, 1  ;;  %v141_v14 = vld [vmem:[#allocation2 + $0x30] sm:$0xfe]  ;;  %v2454_v21 = vpack.c.bf16 %v370_v16, %v368_v15  ;;  %v396_v16 = vld [vmem:[#allocation3 + $0x528] sm:$0xff] }
  0x73   :  { %2395 = vmatprep.subr.bf16.mxu0 %v2394_v18  ;;  %v339_v18 = vld [vmem:[#allocation3 + $0x360] sm:$0xff]  ;;  %v393_v15 = vld [vmem:[#allocation3 + $0x510] sm:$0xff] }
  0x74   :  { %v2428_v28 = vpack.c.bf16 %v341_v47, %v339_v18  ;;  %v176_v47 = vrot.slane %v141_v14, 1  ;;  %v391_v14 = vld [vmem:[#allocation3 + $0x500] sm:$0xff] }
  0x75   :  { %506 = vmatmul.mubr.f32.gmra.mrb[6].mxu0 %v3153_v22 }
  0x76   :  { %2397 = vmatpush1.bf16.msra.mxu0 %v2396_v30  ;;  %576 = vmatprep.mubr.f32.mxu0 %v171_v33  ;;  %v343_v30 = vld [vmem:[#allocation3 + $0x380] sm:$0xff] }
  0x77   :  { %2399 = vmatprep.subr.bf16.mxu0 %v2398_v23  ;;  %v345_v23 = vld [vmem:[#allocation3 + $0x390] sm:$0xff] }
  0x78   :  { %v2432_v33 = vpack.c.bf16 %v345_v23, %v343_v30  ;;  %v143_v23 = vld [vmem:[#allocation2 + $0x50] sm:$0x1] }
  0x7a   :  { %2401 = vmatpush1.bf16.msra.mxu0 %v2400_v35  ;;  %v2436_v35 = vpack.c.bf16 %v349_v32, %v347_v36  ;;  %v178_v36 = vsel %vm165_vm2, %v176_v47, %v177_v20  ;;  %v182_v32 = vrot.slane %v143_v23, 1  ;;  %v395_v47 = vld [vmem:[#allocation3 + $0x520] sm:$0xff]  ;;  %v401_v23 = vld [vmem:[#allocation3 + $0x550] sm:$0xff] }
  0x7b   :  { %2403 = vmatprep.subr.bf16.mxu0 %v2402_v39  ;;  %v351_v39 = vld [vmem:[#allocation3 + $0x3c0] sm:$0xff] }
  0x7c   :  { %v2440_v45 = vpack.c.bf16 %v353_v40, %v351_v39  ;;  %v207_v40 = vrot.slane %v3128_v7, 2 }
  0x7e   :  { %2405 = vmatpush1.bf16.msra.mxu0 %v2404_v49  ;;  %v2442_v49 = vpack.c.bf16 %v358_v44, %v356_v41  ;;  %v376_v41 = vld [vmem:[#allocation3 + $0x488] sm:$0xff]  ;;  %v378_v44 = vld [vmem:[#allocation3 + $0x498] sm:$0xff] }
  0x7f   :  { %2407 = vmatprep.subr.bf16.mxu0 %v2406_v50  ;;  %v355_v50 = vld [vmem:[#allocation3 + $0x3e0] sm:$0xff] }
  0x80   :  { %v2444_v57 = vpack.c.bf16 %v357_v51, %v355_v50  ;;  %v2462_v50 = vpack.c.bf16 %v378_v44, %v376_v41  ;;  %v375_v51 = vld [vmem:[#allocation3 + $0x480] sm:$0xff]  ;;  %v409_v41 = vld [vmem:[#allocation3 + $0x590] sm:$0xff]  ;;  %v412_v44 = vld [vmem:[#allocation3 + $0x5a8] sm:$0xff] }
  0x82   :  { %2409 = vmatpush1.bf16.msra.mxu0 %v2408_v55  ;;  %v140_v55 = vld [vmem:[#allocation2 + $0x28] sm:$0x1] }
  0x83   :  { %2411 = vmatprep.subr.bf16.mxu0 %v2410_v56  ;;  %v167_v56 = vrot.slane %v3136_v11, 1 }
  0x85   :  { %v173_v18 = vsel %vm165_vm2, %v167_v56, %v172_v8 }
  0x86   :  { %2413 = vmatpush1.bf16.msra.mxu0 %v2412_v61  ;;  %v361_v61 = vld [vmem:[#allocation3 + $0x410] sm:$0xff] }
  0x87   :  { %2415 = vmatprep.subr.bf16.mxu0 %v2414_v62  ;;  %v174_v62 = vrot.slane %v140_v55, 1  ;;  %v382_v55 = vld [vmem:[#allocation3 + $0x4b8] sm:$0xff] }
  0x8a   :  { %2417 = vmatpush1.bf16.msra.mxu0 %v2416_v5  ;;  %v168_v5 = vsel %vm165_vm2, %v166_v58, %v167_v56  ;;  %v2464_v56 = vpack.c.bf16 %v377_v52, %v375_v51  ;;  %v379_v58 = vld [vmem:[#allocation3 + $0x4a0] sm:$0xff]  ;;  %v413_v52 = vld [vmem:[#allocation3 + $0x5b0] sm:$0xff] }
  0x8b   :  { %2419 = vmatprep.subr.bf16.mxu0 %v2418_v6  ;;  %v2448_v6 = vpack.c.bf16 %v361_v61, %v359_v60  ;;  %v384_v60 = vld [vmem:[#allocation3 + $0x4c8] sm:$0xff]  ;;  %v386_v61 = vld [vmem:[#allocation3 + $0x4d8] sm:$0xff]  ;;  %v411_v51 = vld [vmem:[#allocation3 + $0x5a0] sm:$0xff] }
  0x8c   :  { %v2470_v63 = vpack.c.bf16 %v386_v61, %v384_v60  ;;  %v422_v60 = vld [vmem:[#allocation3 + $0x5f8] sm:$0xff] }
  0x8e   :  { %2421 = vmatpush1.bf16.msra.mxu0 %v2420_v43  ;;  %v175_v43 = vsel %vm165_vm2, %v170_v25, %v174_v62  ;;  %v369_v25 = vld [vmem:[#allocation3 + $0x450] sm:$0xff] }
  0x8f   :  { %2423 = vmatprep.subr.bf16.mxu0 %v2422_v13  ;;  %v179_v13 = vrot.slane %v142_v4, 1  ;;  %v388_v4 = vld [vmem:[#allocation3 + $0x4e8] sm:$0xff] }
  0x92   :  { %2425 = vmatpush1.bf16.msra.mxu0 %v2424_v17  ;;  %v144_v17 = vld [vmem:[#allocation2 + $0x58] sm:$0x1] }
  0x93   :  { %2427 = vmatprep.subr.bf16.mxu0 %v2426_v19  ;;  %v2452_v19 = vpack.c.bf16 %v365_v12, %v363_v10  ;;  %v184_v30 = vrot.slane %v144_v17, 1  ;;  %v389_v10 = vld [vmem:[#allocation3 + $0x4f0] sm:$0xff]  ;;  %v392_v12 = vld [vmem:[#allocation3 + $0x508] sm:$0xff]  ;;  %v398_v17 = vld [vmem:[#allocation3 + $0x538] sm:$0xff] }
  0x96   :  { %2429 = vmatpush1.bf16.msra.mxu0 %v2428_v28  ;;  %v367_v28 = vld [vmem:[#allocation3 + $0x440] sm:$0xff] }
  0x97   :  { %2431 = vmatprep.subr.bf16.mxu0 %v2430_v29  ;;  %v181_v29 = vsel %vm165_vm2, %v179_v13, %v180_v46 }
  0x9a   :  { %2433 = vmatpush1.bf16.msra.mxu0 %v2432_v33  ;;  %v146_v33 = vld [vmem:[#allocation2 + $0x8] sm:$0xfc] }
  0x9b   :  { %2435 = vmatprep.subr.bf16.mxu0 %v2434_v34  ;;  %v2456_v34 = vpack.c.bf16 %v369_v25, %v367_v28  ;;  %v206_v39 = vrot.slane %v146_v33, 2  ;;  %v402_v28 = vld [vmem:[#allocation3 + $0x558] sm:$0xff] }
  0x9d   :  { %v208_v53 = vsel %vm202_vm3, %v206_v39, %v207_v40  ;;  %v407_v39 = vld [vmem:[#allocation3 + $0x580] sm:$0xff] }
  0x9e   :  { %2437 = vmatpush1.bf16.msra.mxu0 %v2436_v35  ;;  %v373_v35 = vld [vmem:[#allocation3 + $0x470] sm:$0xff] }
  0x9f   :  { %2439 = vmatprep.subr.bf16.mxu0 %v2438_v38  ;;  %v185_v38 = vsel %vm165_vm2, %v180_v46, %v184_v30  ;;  %v399_v30 = vld [vmem:[#allocation3 + $0x540] sm:$0xff] }
  0xa0   :  { %v2488_v33 = vpack.c.bf16 %v401_v23, %v399_v30  ;;  %v736_v30 = vld [vmem:[%s3755_s7 + $0x10] sm:$0xff]  ;;  %v737_v23 = vld [vmem:[%s3755_s7 + $0x18] sm:$0xff] }
  0xa2   :  { %2441 = vmatpush1.bf16.msra.mxu0 %v2440_v45  ;;  %v2460_v45 = vpack.c.bf16 %v373_v35, %v371_v26  ;;  %v410_v26 = vld [vmem:[#allocation3 + $0x598] sm:$0xff] }
  0xa3   :  { %2443 = vmatprep.subr.bf16.mxu0 %v2442_v49  ;;  %v183_v49 = vsel %vm165_vm2, %v177_v20, %v182_v32  ;;  %v397_v20 = vld [vmem:[#allocation3 + $0x530] sm:$0xff] }
  0xa4   :  { %v2484_v25 = vpack.c.bf16 %v397_v20, %v395_v47  ;;  %v405_v32 = vld [vmem:[#allocation3 + $0x570] sm:$0xff] }
  0xa6   :  { %2445 = vmatpush1.bf16.msra.mxu0 %v2444_v57  ;;  %v2466_v57 = vpack.c.bf16 %v382_v55, %v380_v54  ;;  %v418_v54 = vld [vmem:[#allocation3 + $0x5d8] sm:$0xff]  ;;  %v2500_v55 = vpack.c.bf16 %v413_v52, %v411_v51  ;;  %v742_v51 = vld [vmem:[%s3755_s7 + $0x40] sm:$0xff]  ;;  %v743_v52 = vld [vmem:[%s3755_s7 + $0x48] sm:$0xff] }
  0xa7   :  { %2447 = vmatprep.subr.bf16.mxu0 %v2446_v59  ;;  %v381_v59 = vld [vmem:[#allocation3 + $0x4b0] sm:$0xff] }
  0xa8   :  { %v2468_v62 = vpack.c.bf16 %v381_v59, %v379_v58  ;;  %v417_v58 = vld [vmem:[#allocation3 + $0x5d0] sm:$0xff]  ;;  %v420_v59 = vld [vmem:[#allocation3 + $0x5e8] sm:$0xff] }
  0xa9   :  { %577 = vmatmul.mubr.f32.vlgmr.msra.gmra.mrb[0].mxu0 %v168_v5  ;;  %v390_v5 = vld [vmem:[#allocation3 + $0x4f8] sm:$0xff] }
  0xaa   :  { %2449 = vmatpush1.bf16.msra.mxu0 %v2448_v6  ;;  %582 = vmatprep.mubr.f32.mxu0 %v175_v43  ;;  %v2472_v6 = vpack.c.bf16 %v385_v3, %v383_v2  ;;  %v2474_v8 = vpack.c.bf16 %v390_v5, %v388_v4  ;;  %v394_v43 = vld [vmem:[#allocation3 + $0x518] sm:$0xff]  ;;  %v421_v2 = vld [vmem:[#allocation3 + $0x5f0] sm:$0xff]  ;;  %v145_v3 = vld [vmem:[#allocation2] sm:$0xfc]  ;;  %v204_v5 = vrot.slane %v3136_v11, 2 }
  0xab   :  { %2451 = vmatprep.subr.bf16.mxu0 %v2450_v9  ;;  %v387_v9 = vld [vmem:[#allocation3 + $0x4e0] sm:$0xff]  ;;  %v2478_v46 = vpack.c.bf16 %v394_v43, %v392_v12  ;;  %v148_v4 = vld [vmem:[#allocation2 + $0x28] sm:$0x3]  ;;  %v150_v12 = vld [vmem:[#allocation2 + $0x38] sm:$0xfc] }
  0xac   :  { %v2476_v13 = vpack.c.bf16 %v389_v10, %v387_v9  ;;  %v211_v9 = vrot.slane %v148_v4, 2  ;;  %v147_v10 = vld [vmem:[#allocation2 + $0x20] sm:$0x3]  ;;  %v152_v11 = vld [vmem:[#allocation2 + $0x58] sm:$0x3]  ;;  %v764_v4 = vld [vmem:[%s3755_s7 + $0xf0] sm:$0xff] }
  0xad   :  { %583 = vmatmul.mubr.f32.gmra.mrb[2].mxu0 %v173_v18  ;;  %v2482_v18 = vpack.c.bf16 %v398_v17, %v396_v16  ;;  %v149_v16 = vld [vmem:[#allocation2 + $0x30] sm:$0xfc]  ;;  %v221_v20 = vrot.slane %v152_v11, 2 }
  0xae   :  { %2453 = vmatpush1.bf16.msra.mxu0 %v2452_v19  ;;  %588 = vmatprep.mubr.f32.mxu0 %v181_v29  ;;  %v2480_v19 = vpack.c.bf16 %v393_v15, %v391_v14  ;;  %v216_v14 = vrot.slane %v150_v12, 2  ;;  %v217_v15 = vrot.slane %v3144_v48, 2 }
  0xaf   :  { %2455 = vmatprep.subr.bf16.mxu0 %v2454_v21  ;;  %v400_v21 = vld [vmem:[#allocation3 + $0x548] sm:$0xff] }
  0xb0   :  { %v2486_v29 = vpack.c.bf16 %v402_v28, %v400_v21  ;;  %v218_v47 = vsel %vm202_vm3, %v216_v14, %v217_v15  ;;  %v151_v21 = vld [vmem:[#allocation2 + $0x50] sm:$0x3]  ;;  %v222_v48 = vsel %vm202_vm3, %v217_v15, %v221_v20 }
  0xb1   :  { %589 = vmatmul.mubr.f32.gmra.mrb[4].mxu0 %v178_v36  ;;  %v403_v36 = vld [vmem:[#allocation3 + $0x560] sm:$0xff] }
  0xb2   :  { %2457 = vmatpush1.bf16.msra.mxu0 %v2456_v34  ;;  %594 = vmatprep.mubr.f32.mxu0 %v185_v38  ;;  %v2490_v34 = vpack.c.bf16 %v406_v31, %v404_v27  ;;  %v2492_v35 = vpack.c.bf16 %v405_v32, %v403_v36  ;;  %v3219_v27 = vpack.c.bf16 %v737_v23, %v736_v30  ;;  %v754_v31 = vld [vmem:[%s3755_s7 + $0xa0] sm:$0xff]  ;;  %v739_v32 = vld [vmem:[%s3755_s7 + $0x28] sm:$0xff] }
  0xb3   :  { %2459 = vmatprep.subr.bf16.mxu0 %v2458_v24  ;;  %v408_v24 = vld [vmem:[#allocation3 + $0x588] sm:$0xff]  ;;  %v738_v36 = vld [vmem:[%s3755_s7 + $0x20] sm:$0xff] }
  0xb4   :  { %v2494_v38 = vpack.c.bf16 %v410_v26, %v408_v24  ;;  %v3237_v24 = vpack.c.bf16 %v739_v32, %v738_v36  ;;  %v756_v26 = vld [vmem:[%s3755_s7 + $0xb0] sm:$0xff] }
  0xb5   :  { %595 = vmatmul.mubr.f32.gmra.mrb[6].mxu0 %v183_v49  ;;  %v2496_v49 = vpack.c.bf16 %v409_v41, %v407_v39  ;;  %v740_v39 = vld [vmem:[%s3755_s7 + $0x30] sm:$0xff]  ;;  %v741_v41 = vld [vmem:[%s3755_s7 + $0x38] sm:$0xff] }
  0xb6   :  { %2461 = vmatpush1.bf16.msra.mxu0 %v2460_v45  ;;  %665 = vmatprep.mubr.f32.mxu0 %v208_v53  ;;  %v414_v45 = vld [vmem:[#allocation3 + $0x5b8] sm:$0xff]  ;;  %v416_v53 = vld [vmem:[#allocation3 + $0x5c8] sm:$0xff] }
  0xb7   :  { %2463 = vmatprep.subr.bf16.mxu0 %v2462_v50  ;;  %v2498_v50 = vpack.c.bf16 %v414_v45, %v412_v44  ;;  %v3255_v44 = vpack.c.bf16 %v741_v41, %v740_v39  ;;  %v758_v45 = vld [vmem:[%s3755_s7 + $0xc0] sm:$0xff] }
  0xba   :  { %2465 = vmatpush1.bf16.msra.mxu0 %v2464_v56  ;;  %v2502_v56 = vpack.c.bf16 %v418_v54, %v416_v53  ;;  %v3273_v53 = vpack.c.bf16 %v743_v52, %v742_v51  ;;  %v760_v54 = vld [vmem:[%s3755_s7 + $0xd0] sm:$0xff] }
  0xbb   :  { %2467 = vmatprep.subr.bf16.mxu0 %v2466_v57  ;;  %v415_v57 = vld [vmem:[#allocation3 + $0x5c0] sm:$0xff] }
  0xbc   :  { %v2504_v61 = vpack.c.bf16 %v417_v58, %v415_v57  ;;  %v744_v57 = vld [vmem:[%s3755_s7 + $0x50] sm:$0xff]  ;;  %v745_v58 = vld [vmem:[%s3755_s7 + $0x58] sm:$0xff] }
  0xbe   :  { %2469 = vmatpush1.bf16.msra.mxu0 %v2468_v62  ;;  %v2506_v62 = vpack.c.bf16 %v422_v60, %v420_v59  ;;  %v3291_v59 = vpack.c.bf16 %v745_v58, %v744_v57  ;;  %v762_v60 = vld [vmem:[%s3755_s7 + $0xe0] sm:$0xff] }
  0xbf   :  { %2471 = vmatprep.subr.bf16.mxu0 %v2470_v63  ;;  %v419_v63 = vld [vmem:[#allocation3 + $0x5e0] sm:$0xff] }
  0xc2   :  { %2473 = vmatpush1.bf16.msra.mxu0 %v2472_v6  ;;  %v2508_v6 = vpack.c.bf16 %v421_v2, %v419_v63  ;;  %v746_v63 = vld [vmem:[%s3755_s7 + $0x60] sm:$0xff]  ;;  %v747_v2 = vld [vmem:[%s3755_s7 + $0x68] sm:$0xff] }
  0xc3   :  { %2475 = vmatprep.subr.bf16.mxu0 %v2474_v8  ;;  %v203_v8 = vrot.slane %v145_v3, 2  ;;  %v3309_v3 = vpack.c.bf16 %v747_v2, %v746_v63 }
  0xc5   :  { %v205_v43 = vsel %vm202_vm3, %v203_v8, %v204_v5 }
  0xc6   :  { %2477 = vmatpush1.bf16.msra.mxu0 %v2476_v13  ;;  %v209_v13 = vrot.slane %v147_v10, 2 }
  0xc7   :  { %2479 = vmatprep.subr.bf16.mxu0 %v2478_v46  ;;  %v212_v46 = vsel %vm202_vm3, %v207_v40, %v211_v9  ;;  %v219_v40 = vrot.slane %v151_v21, 2  ;;  %v749_v9 = vld [vmem:[%s3755_s7 + $0x78] sm:$0xff] }
  0xc8   :  { %v210_v17 = vsel %vm202_vm3, %v204_v5, %v209_v13  ;;  %v765_v5 = vld [vmem:[%s3755_s7 + $0xf8] sm:$0xff] }
  0xc9   :  { %v3322_v8 = vpack.c.bf16 %v765_v5, %v764_v4 }
  0xca   :  { %2481 = vmatpush1.bf16.msra.mxu0 %v2480_v19  ;;  %v213_v19 = vrot.slane %v149_v16, 2 }
  0xcb   :  { %2483 = vmatprep.subr.bf16.mxu0 %v2482_v18  ;;  %v214_v18 = vrot.slane %v3153_v22, 2  ;;  %v752_v22 = vld [vmem:[%s3755_s7 + $0x90] sm:$0xff] }
  0xcd   :  { %v215_v7 = vsel %vm202_vm3, %v213_v19, %v214_v18  ;;  %v220_v28 = vsel %vm202_vm3, %v214_v18, %v219_v40 }
  0xce   :  { %2485 = vmatpush1.bf16.msra.mxu0 %v2484_v25  ;;  %v753_v25 = vld [vmem:[%s3755_s7 + $0x98] sm:$0xff] }
  0xcf   :  { %2487 = vmatprep.subr.bf16.mxu0 %v2486_v29  ;;  %v3211_v29 = vpack.c.bf16 %v753_v25, %v752_v22 }
  0xd1   :  { %2515 = vmatprep.subr.bf16.mxu1 %v3211_v29 }
  0xd2   :  { %2489 = vmatpush1.bf16.msra.mxu0 %v2488_v33  ;;  %2517 = vmatpush3.bf16.msra.mxu1 %v3219_v27  ;;  %v755_v33 = vld [vmem:[%s3755_s7 + $0xa8] sm:$0xff] }
  0xd3   :  { %2491 = vmatprep.subr.bf16.mxu0 %v2490_v34  ;;  %v3229_v34 = vpack.c.bf16 %v755_v33, %v754_v31 }
  0xd5   :  { %2519 = vmatprep.subr.bf16.mxu1 %v3229_v34 }
  0xd6   :  { %2493 = vmatpush1.bf16.msra.mxu0 %v2492_v35  ;;  %2521 = vmatpush3.bf16.msra.mxu1 %v3237_v24  ;;  %v757_v35 = vld [vmem:[%s3755_s7 + $0xb8] sm:$0xff] }
  0xd7   :  { %2495 = vmatprep.subr.bf16.mxu0 %v2494_v38  ;;  %v3247_v38 = vpack.c.bf16 %v757_v35, %v756_v26 }
  0xd9   :  { %2523 = vmatprep.subr.bf16.mxu1 %v3247_v38 }
  0xda   :  { %2497 = vmatpush1.bf16.msra.mxu0 %v2496_v49  ;;  %2525 = vmatpush3.bf16.msra.mxu1 %v3255_v44  ;;  %v759_v49 = vld [vmem:[%s3755_s7 + $0xc8] sm:$0xff] }
  0xdb   :  { %2499 = vmatprep.subr.bf16.mxu0 %v2498_v50  ;;  %v3265_v50 = vpack.c.bf16 %v759_v49, %v758_v45 }
  0xdd   :  { %2527 = vmatprep.subr.bf16.mxu1 %v3265_v50 }
  0xde   :  { %2501 = vmatpush1.bf16.msra.mxu0 %v2500_v55  ;;  %2529 = vmatpush3.bf16.msra.mxu1 %v3273_v53  ;;  %v761_v55 = vld [vmem:[%s3755_s7 + $0xd8] sm:$0xff] }
  0xdf   :  { %2503 = vmatprep.subr.bf16.mxu0 %v2502_v56  ;;  %v3283_v56 = vpack.c.bf16 %v761_v55, %v760_v54 }
  0xe1   :  { %2531 = vmatprep.subr.bf16.mxu1 %v3283_v56 }
  0xe2   :  { %2505 = vmatpush1.bf16.msra.mxu0 %v2504_v61  ;;  %2533 = vmatpush3.bf16.msra.mxu1 %v3291_v59  ;;  %v763_v61 = vld [vmem:[%s3755_s7 + $0xe8] sm:$0xff] }
  0xe3   :  { %2507 = vmatprep.subr.bf16.mxu0 %v2506_v62  ;;  %v3301_v62 = vpack.c.bf16 %v763_v61, %v762_v60 }
  0xe5   :  { %2535 = vmatprep.subr.bf16.mxu1 %v3301_v62 }
  0xe6   :  { %2509 = vmatpush1.bf16.msra.mxu0 %v2508_v6  ;;  %2537 = vmatpush3.bf16.msra.mxu1 %v3309_v3  ;;  %v748_v6 = vld [vmem:[%s3755_s7 + $0x70] sm:$0xff] }
  0xe7   :  { %v3327_v10 = vpack.c.bf16 %v749_v9, %v748_v6  ;;  %2539 = vmatprep.subr.bf16.mxu1 %v3322_v8 }
  0xe9   :  { %666 = vmatmul.mubr.f32.vlgmr.msra.gmra.mrb[0].mxu0 %v205_v43 }
  0xea   :  { %671 = vmatprep.mubr.f32.mxu0 %v212_v46  ;;  %2541 = vmatpush3.bf16.msra.mxu1 %v3327_v10 }
  0xeb   :  { %2543 = vmatprep.subr.bf16.mxu1 %v3168_v37 }
  0xed   :  { %672 = vmatmul.mubr.f32.gmra.mrb[2].mxu0 %v210_v17 }
  0xee   :  { %677 = vmatprep.mubr.f32.mxu0 %v218_v47 }
  0xf1   :  { %678 = vmatmul.mubr.f32.gmra.mrb[4].mxu0 %v215_v7 }
  0xf2   :  { %683 = vmatprep.mubr.f32.mxu0 %v222_v48 }
  0xf5   :  { %684 = vmatmul.mubr.f32.gmra.mrb[6].mxu0 %v220_v28 }
 0x1bc   :  { %v3332_v12 = vpop.f32.mrb[0].mxu0 }
 0x1bd   :  { %v3334_v43 = vpop.f32.mrb[1].mxu0  ;;  %v708_v46 = vmul.f32 %v3332_v12, %v3332_v12 }
 0x1be   :  { %v709_v37 = vmul.f32 %v3334_v43, %v3334_v43 }
 0x1c0   :  { %v3336_v13 = vpop.f32.mrb[2].mxu0 }
 0x1c1   :  { %v690_v14 = vadd.f32 %v3336_v13, %v3332_v12  ;;  %v710_v15 = vmul.f32 %v3336_v13, %v3336_v13  ;;  %v3344_v16 = vpop.f32.mrb[3].mxu0 }
 0x1c2   :  { %v699_v11 = vadd.f32 %v3344_v16, %v3334_v43  ;;  %v711_v17 = vmul.f32 %v3344_v16, %v3344_v16 }
 0x1c3   :  { %v716_v19 = vadd.f32 %v710_v15, %v708_v46 }
 0x1c4   :  { %v725_v18 = vadd.f32 %v711_v17, %v709_v37  ;;  %v3352_v47 = vpop.f32.mrb[4].mxu0 }
 0x1c5   :  { %v691_v20 = vadd.f32 %v690_v14, %v3352_v47  ;;  %v712_v21 = vmul.f32 %v3352_v47, %v3352_v47  ;;  %v3357_v7 = vpop.f32.mrb[5].mxu0 }
 0x1c6   :  { %v700_v40 = vadd.f32 %v699_v11, %v3357_v7  ;;  %v713_v48 = vmul.f32 %v3357_v7, %v3357_v7 }
 0x1c7   :  { %v717_v28 = vadd.f32 %v716_v19, %v712_v21  ;;  %v1273_v21 = vld [vmem:[#allocation6 + $0x18] sm:$0xff] }
 0x1c8   :  { %v726_v22 = vadd.f32 %v725_v18, %v713_v48  ;;  %v3362_v25 = vpop.f32.mrb[6].mxu0  ;;  %v910_v18 = vld [vmem:[%s3751_s3] sm:$0x1] }
 0x1c9   :  { %v692_v30 = vadd.f32 %v691_v20, %v3362_v25  ;;  %v714_v23 = vmul.f32 %v3362_v25, %v3362_v25  ;;  %v3367_v31 = vpop.f32.mrb[7].mxu0  ;;  %v1271_v20 = vld [vmem:[#allocation6 + $0x8] sm:$0xff] }
 0x1ca   :  { %v701_v33 = vadd.f32 %v700_v40, %v3367_v31  ;;  %v715_v36 = vmul.f32 %v3367_v31, %v3367_v31 }
 0x1cb   :  { %v693_v32 = vrot.slane %v692_v30, 4  ;;  %v718_v26 = vadd.f32 %v717_v28, %v714_v23  ;;  %v2582_v28 = vpack.c.bf16 %v1273_v21, %v1271_v20  ;;  %v914_v23 = vld [vmem:[%s3752_s4] sm:$0x1] }
 0x1cc   :  { %v702_v35 = vrot.slane %v701_v33, 4  ;;  %v727_v39 = vadd.f32 %v726_v22, %v715_v36  ;;  %v1270_v22 = vld [vmem:[#allocation6] sm:$0xff]  ;;  %v1277_v36 = vld [vmem:[#allocation6 + $0x38] sm:$0xff] }
 0x1cd   :  { %v694_v41 = vadd.f32 %v693_v32, %v692_v30  ;;  %v719_v9 = vrot.slane %v718_v26, 4  ;;  %v1272_v30 = vld [vmem:[#allocation6 + $0x10] sm:$0xff] }
 0x1ce   :  { %v728_v45 = vrot.slane %v727_v39, 4  ;;  %v703_v49 = vadd.f32 %v702_v35, %v701_v33  ;;  %v1275_v33 = vld [vmem:[#allocation6 + $0x28] sm:$0xff] }
 0x1cf   :  { %v695_v51 = vrot.slane %v694_v41, 2  ;;  %v720_v46 = vadd.f32 %v719_v9, %v718_v26  ;;  %v2584_v26 = vpack.c.bf16 %v1272_v30, %v1270_v22  ;;  %v1309_v22 = vld [vmem:[#allocation6 + $0x138] sm:$0xff] }
 0x1d0   :  { %v729_v52 = vadd.f32 %v728_v45, %v727_v39  ;;  %v704_v54 = vrot.slane %v703_v49, 2  ;;  %v2586_v39 = vpack.c.bf16 %v1277_v36, %v1275_v33  ;;  %v1276_v45 = vld [vmem:[#allocation6 + $0x30] sm:$0xff]  ;;  %v1306_v33 = vld [vmem:[#allocation6 + $0x120] sm:$0xff] }
 0x1d1   :  { %v696_v55 = vadd.f32 %v695_v51, %v694_v41  ;;  %v1274_v41 = vld [vmem:[#allocation6 + $0x20] sm:$0xff]  ;;  %v1281_v51 = vld [vmem:[#allocation6 + $0x58] sm:$0xff]  ;;  %v1308_v36 = vld [vmem:[#allocation6 + $0x130] sm:$0xff] }
 0x1d2   :  { %v705_v57 = vadd.f32 %v704_v54, %v703_v49  ;;  %v730_v58 = vrot.slane %v729_v52, 2  ;;  %v1279_v49 = vld [vmem:[#allocation6 + $0x48] sm:$0xff] }
 0x1d3   :  { %v697_v60 = vrot.slane %v696_v55, 1  ;;  %v2590_v54 = vpack.c.bf16 %v1281_v51, %v1279_v49  ;;  %v1315_v51 = vld [vmem:[#allocation6 + $0x168] sm:$0xff] }
 0x1d4   :  { %v706_v61 = vrot.slane %v705_v57, 1  ;;  %v731_v63 = vadd.f32 %v730_v58, %v729_v52  ;;  %v2588_v52 = vpack.c.bf16 %v1276_v45, %v1274_v41  ;;  %v1283_v58 = vld [vmem:[#allocation6 + $0x68] sm:$0xff]  ;;  %v1310_v41 = vld [vmem:[#allocation6 + $0x140] sm:$0xff]  ;;  %v1312_v45 = vld [vmem:[#allocation6 + $0x150] sm:$0xff] }
 0x1d5   :  { %v698_v5 = vadd.f32 %v697_v60, %v696_v55  ;;  %v1278_v55 = vld [vmem:[#allocation6 + $0x40] sm:$0xff]  ;;  %v1285_v60 = vld [vmem:[#allocation6 + $0x78] sm:$0xff]  ;;  %v2624_v49 = vpack.c.bf16 %v1312_v45, %v1310_v41 }
 0x1d6   :  { %v707_v2 = vadd.f32 %v706_v61, %v705_v57  ;;  %v732_v4 = vrot.slane %v731_v63, 1  ;;  %v1280_v57 = vld [vmem:[#allocation6 + $0x50] sm:$0xff] }
 0x1d7   :  { %v2592_v61 = vpack.c.bf16 %v1280_v57, %v1278_v55  ;;  %v1314_v55 = vld [vmem:[#allocation6 + $0x160] sm:$0xff]  ;;  %v1316_v57 = vld [vmem:[#allocation6 + $0x170] sm:$0xff] }
 0x1d8   :  { %830 = vmatprep.mubr.f32.mxu1 %v707_v2  ;;  %v733_v6 = vadd.f32 %v732_v4, %v731_v63  ;;  %v2594_v63 = vpack.c.bf16 %v1285_v60, %v1283_v58  ;;  %v1282_v2 = vld [vmem:[#allocation6 + $0x60] sm:$0xff]  ;;  %v1284_v4 = vld [vmem:[#allocation6 + $0x70] sm:$0xff]  ;;  %v2628_v58 = vpack.c.bf16 %v1316_v57, %v1314_v55  ;;  %v1319_v60 = vld [vmem:[#allocation6 + $0x188] sm:$0xff] }
 0x1d9   :  { %831 = vmatmul.mubr.f32.vlgmr.msra.gmra.mrb[0].mxu1 %v698_v5  ;;  %v1287_v5 = vld [vmem:[#allocation6 + $0x88] sm:$0xff]  ;;  %v2596_v9 = vpack.c.bf16 %v1284_v4, %v1282_v2  ;;  %v1318_v2 = vld [vmem:[#allocation6 + $0x180] sm:$0xff]  ;;  %v1320_v4 = vld [vmem:[#allocation6 + $0x190] sm:$0xff] }
 0x1da   :  { %2545 = vmatpush3.bf16.msra.mxu1 %v3173_v42  ;;  %900 = vmatprep.mubr.f32.mxu1 %v733_v6  ;;  %v721_v42 = vrot.slane %v720_v46, 2  ;;  %v1289_v6 = vld [vmem:[#allocation6 + $0x98] sm:$0xff] }
 0x1db   :  { %2547 = vmatprep.subr.bf16.mxu1 %v3211_v29 }
 0x1dc   :  { %v722_v29 = vadd.f32 %v721_v42, %v720_v46  ;;  %v2598_v46 = vpack.c.bf16 %v1289_v6, %v1287_v5  ;;  %v1286_v42 = vld [vmem:[#allocation6 + $0x80] sm:$0xff]  ;;  %v2632_v5 = vpack.c.bf16 %v1320_v4, %v1318_v2  ;;  %v1323_v6 = vld [vmem:[#allocation6 + $0x1a8] sm:$0xff] }
 0x1de   :  { %2549 = vmatpush3.bf16.msra.mxu1 %v3219_v27  ;;  %v723_v27 = vrot.slane %v722_v29, 1 }
 0x1df   :  { %2551 = vmatprep.subr.bf16.mxu1 %v3229_v34 }
 0x1e0   :  { %v724_v34 = vadd.f32 %v723_v27, %v722_v29  ;;  %v1288_v29 = vld [vmem:[#allocation6 + $0x90] sm:$0xff]  ;;  %v1291_v27 = vld [vmem:[#allocation6 + $0xa8] sm:$0xff] }
 0x1e2   :  { %2553 = vmatpush3.bf16.msra.mxu1 %v3237_v24  ;;  %v918_v24 = vld [vmem:[%s3756_s8 + $0x8] sm:$0xff] }
 0x1e3   :  { %2555 = vmatprep.subr.bf16.mxu1 %v3247_v38  ;;  %v920_v38 = vld [vmem:[%s3756_s8 + $0x18] sm:$0xff] }
 0x1e6   :  { %2557 = vmatpush3.bf16.msra.mxu1 %v3255_v44  ;;  %v917_v44 = vld [vmem:[%s3756_s8] sm:$0xff] }
 0x1e7   :  { %2559 = vmatprep.subr.bf16.mxu1 %v3265_v50  ;;  %v2574_v50 = vpack.c.bf16 %v920_v38, %v918_v24  ;;  %v2600_v24 = vpack.c.bf16 %v1288_v29, %v1286_v42  ;;  %v1322_v42 = vld [vmem:[#allocation6 + $0x1a0] sm:$0xff]  ;;  %v1324_v29 = vld [vmem:[#allocation6 + $0x1b0] sm:$0xff] }
 0x1ea   :  { %2561 = vmatpush3.bf16.msra.mxu1 %v3273_v53  ;;  %v919_v53 = vld [vmem:[%s3756_s8 + $0x10] sm:$0xff] }
 0x1eb   :  { %2563 = vmatprep.subr.bf16.mxu1 %v3283_v56  ;;  %v2576_v56 = vpack.c.bf16 %v919_v53, %v917_v44  ;;  %v1290_v44 = vld [vmem:[#allocation6 + $0xa0] sm:$0xff]  ;;  %v1295_v53 = vld [vmem:[#allocation6 + $0xc8] sm:$0xff] }
 0x1ee   :  { %2565 = vmatpush3.bf16.msra.mxu1 %v3291_v59 }
 0x1ef   :  { %2567 = vmatprep.subr.bf16.mxu1 %v3301_v62 }
 0x1f2   :  { %2569 = vmatpush3.bf16.msra.mxu1 %v3309_v3 }
 0x1f3   :  { %2571 = vmatprep.subr.bf16.mxu1 %v3322_v8 }
 0x1f6   :  { %2573 = vmatpush3.bf16.msra.mxu1 %v3327_v10 }
 0x1f7   :  { %2575 = vmatprep.subr.bf16.mxu1 %v2574_v50 }
 0x1f9   :  { %901 = vmatmul.mubr.f32.vlgmr.msra.gmra.mrb[2].mxu1 %v724_v34  ;;  %v1293_v34 = vld [vmem:[#allocation6 + $0xb8] sm:$0xff] }
 0x1fa   :  { %989 = vmatprep.mubr.f32.mxu1 %v2972_v1  ;;  %2577 = vmatpush1.bf16.msra.mxu1 %v2576_v56  ;;  %v2602_v38 = vpack.c.bf16 %v1293_v34, %v1291_v27  ;;  %v2636_v27 = vpack.c.bf16 %v1324_v29, %v1322_v42  ;;  %v1327_v34 = vld [vmem:[#allocation6 + $0x1c8] sm:$0xff] }
 0x1fb   :  { %2579 = vmatprep.subr.bf16.mxu1 %v2574_v50  ;;  %v1292_v50 = vld [vmem:[#allocation6 + $0xb0] sm:$0xff] }
 0x2ac   :  { %v2210_v59 = vpop.f32.mrb[0].mxu1 }
 0x2ad   :  { %v2211_v62 = vpop.f32.mrb[1].mxu1 }
 0x2ae   :  { %v2212_v3 = vadd.f32 %v2211_v62, %v2210_v59  ;;  %v2604_v59 = vpack.c.bf16 %v1292_v50, %v1290_v44  ;;  %v1326_v44 = vld [vmem:[#allocation6 + $0x1c0] sm:$0xff]  ;;  %v1328_v50 = vld [vmem:[#allocation6 + $0x1d0] sm:$0xff] }
 0x2b0   :  { %v906_v8 = vmul.f32 0.001953125, %v2212_v3  ;;  %v1294_v3 = vld [vmem:[#allocation6 + $0xc0] sm:$0xff] }
 0x2b2   :  { %v908_v37 = vmul.f32 %v906_v8, %v906_v8 }
 0x2cc   :  { %v2245_v10 = vpop.f32.mrb[2].mxu1 }
 0x2cd   :  { %v2246_v14 = vpop.f32.mrb[3].mxu1 }
 0x2ce   :  { %v2247_v15 = vadd.f32 %v2246_v14, %v2245_v10  ;;  %v1299_v10 = vld [vmem:[#allocation6 + $0xe8] sm:$0xff]  ;;  %v1301_v14 = vld [vmem:[#allocation6 + $0xf8] sm:$0xff] }
 0x2d0   :  { %v907_v11 = vmul.f32 0.001953125, %v2247_v15 }
 0x2d2   :  { %v909_v17 = vsub.f32 %v907_v11, %v908_v37  ;;  %v2610_v37 = vpack.c.bf16 %v1301_v14, %v1299_v10  ;;  %v1298_v11 = vld [vmem:[#allocation6 + $0xe0] sm:$0xff]  ;;  %v1335_v14 = vld [vmem:[#allocation6 + $0x208] sm:$0xff] }
 0x2d4   :  { %v911_v19 = vadd.f32 1e-05, %v909_v17  ;;  %v1300_v17 = vld [vmem:[#allocation6 + $0xf0] sm:$0xff] }
 0x2d5   :  { %v2612_v20 = vpack.c.bf16 %v1300_v17, %v1298_v11  ;;  %v1071_v11 = vshrl.u32 %v61_v0, 7 }
 0x2d6   :  { %2884 = vrsqrt.f32 %v911_v19  ;;  %v1303_v19 = vld [vmem:[#allocation6 + $0x108] sm:$0xff] }
 0x2d7   :  { %v3410_v17 = vsub.s32 0, %v1071_v11 }
 0x2e0   :  { %v2885_v40 = vpop.eup %2884 }
 0x2e1   :  { %v913_v48 = vmul.f32 %v2885_v40, %v910_v18  ;;  %v1305_v18 = vld [vmem:[#allocation6 + $0x118] sm:$0xff]  ;;  %v1302_v40 = vld [vmem:[#allocation6 + $0x100] sm:$0xff] }
 0x2e2   :  { %v2614_v21 = vpack.c.bf16 %v1305_v18, %v1303_v19 }
 0x2e3   :  { %2174 = vmatmul.mubr.msk.f32.vlgmr.msra.gmra.mrb[4].mxu1 %vm921_vm4, %v913_v48  ;;  %v915_v32 = vmul.f32 %v913_v48, %v906_v8  ;;  %v1296_v8 = vld [vmem:[#allocation6 + $0xd0] sm:$0xff] }
 0x2e4   :  { %2581 = vmatpush1.bf16.msra.mxu1 %v2576_v56  ;;  %1063 = vmatprep.mubr.f32.mxu1 %v2972_v1  ;;  %v1297_v56 = vld [vmem:[#allocation6 + $0xd8] sm:$0xff]  ;;  %v2608_v15 = vpack.c.bf16 %v1296_v8, %v1294_v3  ;;  %v1304_v48 = vld [vmem:[#allocation6 + $0x110] sm:$0xff] }
 0x2e5   :  { %v916_v35 = vsub.f32 %v914_v23, %v915_v32  ;;  %2583 = vmatprep.subr.bf16.mxu1 %v2582_v28  ;;  %v2606_v62 = vpack.c.bf16 %v1297_v56, %v1295_v53  ;;  %v1307_v28 = vld [vmem:[#allocation6 + $0x128] sm:$0xff]  ;;  %v2616_v30 = vpack.c.bf16 %v1304_v48, %v1302_v40  ;;  %v2640_v53 = vpack.c.bf16 %v1328_v50, %v1326_v44  ;;  %v1332_v8 = vld [vmem:[#allocation6 + $0x1f0] sm:$0xff] }
 0x2e6   :  { %v2618_v23 = vpack.c.bf16 %v1309_v22, %v1307_v28  ;;  %v1311_v32 = vld [vmem:[#allocation6 + $0x148] sm:$0xff] }
 0x2e7   :  { %2175 = vmatmul.mubr.msk.f32.vlgmr.msra.gmra.mrb[6].mxu1 %vm921_vm4, %v916_v35  ;;  %v2620_v35 = vpack.c.bf16 %v1308_v36, %v1306_v33  ;;  %v1331_v56 = vld [vmem:[#allocation6 + $0x1e8] sm:$0xff] }
 0x2e8   :  { %2585 = vmatpush1.bf16.msra.mxu1 %v2584_v26  ;;  %v1313_v26 = vld [vmem:[#allocation6 + $0x158] sm:$0xff] }
 0x2e9   :  { %2587 = vmatprep.subr.bf16.mxu1 %v2586_v39  ;;  %v2622_v39 = vpack.c.bf16 %v1313_v26, %v1311_v32 }
 0x2ec   :  { %2589 = vmatpush1.bf16.msra.mxu1 %v2588_v52  ;;  %v1317_v52 = vld [vmem:[#allocation6 + $0x178] sm:$0xff] }
 0x2ed   :  { %2591 = vmatprep.subr.bf16.mxu1 %v2590_v54  ;;  %v2626_v54 = vpack.c.bf16 %v1317_v52, %v1315_v51 }
 0x2f0   :  { %2593 = vmatpush1.bf16.msra.mxu1 %v2592_v61  ;;  %v1321_v61 = vld [vmem:[#allocation6 + $0x198] sm:$0xff] }
 0x2f1   :  { %2595 = vmatprep.subr.bf16.mxu1 %v2594_v63  ;;  %v2630_v63 = vpack.c.bf16 %v1321_v61, %v1319_v60 }
 0x2f4   :  { %2597 = vmatpush1.bf16.msra.mxu1 %v2596_v9  ;;  %v1325_v9 = vld [vmem:[#allocation6 + $0x1b8] sm:$0xff] }
 0x2f5   :  { %2599 = vmatprep.subr.bf16.mxu1 %v2598_v46  ;;  %v2634_v46 = vpack.c.bf16 %v1325_v9, %v1323_v6 }
 0x2f8   :  { %2601 = vmatpush1.bf16.msra.mxu1 %v2600_v24  ;;  %v1329_v24 = vld [vmem:[#allocation6 + $0x1d8] sm:$0xff] }
 0x2f9   :  { %2603 = vmatprep.subr.bf16.mxu1 %v2602_v38  ;;  %v2638_v38 = vpack.c.bf16 %v1329_v24, %v1327_v34 }
 0x2fc   :  { %2605 = vmatpush1.bf16.msra.mxu1 %v2604_v59  ;;  %v1333_v59 = vld [vmem:[#allocation6 + $0x1f8] sm:$0xff] }
 0x2fd   :  { %2607 = vmatprep.subr.bf16.mxu1 %v2606_v62  ;;  %v1330_v62 = vld [vmem:[#allocation6 + $0x1e0] sm:$0xff]  ;;  %v2642_v3 = vpack.c.bf16 %v1333_v59, %v1331_v56  ;;  %v1336_v59 = vld [vmem:[#allocation6 + $0x210] sm:$0xff] }
 0x2fe   :  { %v2644_v10 = vpack.c.bf16 %v1332_v8, %v1330_v62  ;;  %v1334_v56 = vld [vmem:[#allocation6 + $0x200] sm:$0xff]  ;;  %v1339_v62 = vld [vmem:[#allocation6 + $0x228] sm:$0xff] }
 0x2ff   :  { %v2648_v8 = vpack.c.bf16 %v1336_v59, %v1334_v56  ;;  %v1367_v56 = vld [vmem:[#allocation6 + $0x308] sm:$0xff]  ;;  %v1369_v59 = vld [vmem:[#allocation6 + $0x318] sm:$0xff] }
 0x300   :  { %2609 = vmatpush1.bf16.msra.mxu1 %v2608_v15  ;;  %v1337_v15 = vld [vmem:[#allocation6 + $0x218] sm:$0xff] }
 0x301   :  { %2611 = vmatprep.subr.bf16.mxu1 %v2610_v37  ;;  %v2646_v37 = vpack.c.bf16 %v1337_v15, %v1335_v14  ;;  %v1338_v15 = vld [vmem:[#allocation6 + $0x220] sm:$0xff] }
 0x304   :  { %2613 = vmatpush1.bf16.msra.mxu1 %v2612_v20 }
 0x305   :  { %2615 = vmatprep.subr.bf16.mxu1 %v2614_v21 }
 0x308   :  { %2617 = vmatpush1.bf16.msra.mxu1 %v2616_v30 }
 0x309   :  { %2619 = vmatprep.subr.bf16.mxu1 %v2618_v23 }
 0x30c   :  { %2621 = vmatpush1.bf16.msra.mxu1 %v2620_v35 }
 0x30d   :  { %2623 = vmatprep.subr.bf16.mxu1 %v2622_v39 }
 0x310   :  { %2625 = vmatpush1.bf16.msra.mxu1 %v2624_v49 }
 0x311   :  { %2627 = vmatprep.subr.bf16.mxu1 %v2626_v54 }
 0x314   :  { %2629 = vmatpush1.bf16.msra.mxu1 %v2628_v58 }
 0x315   :  { %2631 = vmatprep.subr.bf16.mxu1 %v2630_v63 }
 0x318   :  { %2633 = vmatpush1.bf16.msra.mxu1 %v2632_v5 }
 0x319   :  { %2635 = vmatprep.subr.bf16.mxu1 %v2634_v46 }
 0x31c   :  { %2637 = vmatpush1.bf16.msra.mxu1 %v2636_v27 }
 0x31d   :  { %2639 = vmatprep.subr.bf16.mxu1 %v2638_v38 }
 0x320   :  { %2641 = vmatpush1.bf16.msra.mxu1 %v2640_v53 }
 0x321   :  { %2643 = vmatprep.subr.bf16.mxu1 %v2642_v3  ;;  %v1341_v3 = vld [vmem:[#allocation6 + $0x238] sm:$0xff] }
 0x322   :  { %v2650_v14 = vpack.c.bf16 %v1341_v3, %v1339_v62  ;;  %v2678_v3 = vpack.c.bf16 %v1369_v59, %v1367_v56  ;;  %v1400_v56 = vld [vmem:[#allocation6 + $0x410] sm:$0xff] }
 0x324   :  { %2645 = vmatpush1.bf16.msra.mxu1 %v2644_v10 }
 0x325   :  { %2647 = vmatprep.subr.bf16.mxu1 %v2646_v37  ;;  %v1340_v37 = vld [vmem:[#allocation6 + $0x230] sm:$0xff] }
 0x3b6   :  { %v991_v19 = vpop.f32.mrb[4].mxu1 }
 0x3b7   :  { %v1073_v18 = vrot.slane %v991_v19, %v3410_v17  ;;  %v993_v20 = vpop.f32.mrb[5].mxu1  ;;  %v1343_v19 = vld [vmem:[#allocation6 + $0x248] sm:$0xff] }
 0x3b8   :  { %v1077_v21 = vrot.slane %v993_v20, %v3410_v17  ;;  %v2652_v20 = vpack.c.bf16 %v1340_v37, %v1338_v15  ;;  %v1373_v15 = vld [vmem:[#allocation6 + $0x338] sm:$0xff] }
 0x3b9   :  { %v1078_v40 = vmul.f32 %v1073_v18, %v3332_v12  ;;  %v1080_v48 = vmul.f32 %v1073_v18, %v3336_v13  ;;  %v1082_v28 = vmul.f32 %v1073_v18, %v3352_v47  ;;  %v1084_v22 = vmul.f32 %v1073_v18, %v3362_v25  ;;  %v1345_v18 = vld [vmem:[#allocation6 + $0x258] sm:$0xff] }
 0x3ba   :  { %v1079_v30 = vmul.f32 %v1077_v21, %v3334_v43  ;;  %v1081_v0 = vmul.f32 %v1077_v21, %v3344_v16  ;;  %v1083_v23 = vmul.f32 %v1077_v21, %v3357_v7  ;;  %v1085_v33 = vmul.f32 %v1077_v21, %v3367_v31  ;;  %v1065_v36 = vpop.f32.mrb[6].mxu1 }
 0x3bb   :  { %v1089_v32 = vrot.slane %v1065_v36, %v3410_v17  ;;  %v1067_v26 = vpop.f32.mrb[7].mxu1  ;;  %v2654_v21 = vpack.c.bf16 %v1345_v18, %v1343_v19  ;;  %v1346_v36 = vld [vmem:[#allocation6 + $0x260] sm:$0xff]  ;;  %v1372_v18 = vld [vmem:[#allocation6 + $0x330] sm:$0xff] }
 0x3bc   :  { %v1093_v12 = vrot.slane %v1067_v26, %v3410_v17  ;;  %v1370_v19 = vld [vmem:[#allocation6 + $0x320] sm:$0xff] }
 0x3bd   :  { %v1094_v35 = vadd.f32 %v1089_v32, %v1078_v40  ;;  %v1096_v13 = vadd.f32 %v1089_v32, %v1080_v48  ;;  %v1098_v39 = vadd.f32 %v1089_v32, %v1082_v28  ;;  %v1100_v47 = vadd.f32 %v1089_v32, %v1084_v22  ;;  %v1342_v40 = vld [vmem:[#allocation6 + $0x240] sm:$0xff]  ;;  %v1344_v48 = vld [vmem:[#allocation6 + $0x250] sm:$0xff]  ;;  %v1347_v28 = vld [vmem:[#allocation6 + $0x268] sm:$0xff] }
 0x3be   :  { %v1095_v41 = vadd.f32 %v1093_v12, %v1079_v30  ;;  %v1097_v25 = vadd.f32 %v1093_v12, %v1081_v0  ;;  %v1099_v45 = vadd.f32 %v1093_v12, %v1083_v23  ;;  %v1101_v43 = vadd.f32 %v1093_v12, %v1085_v33  ;;  %v1349_v22 = vld [vmem:[#allocation6 + $0x278] sm:$0xff]  ;;  %v1348_v32 = vld [vmem:[#allocation6 + $0x270] sm:$0xff]  ;;  %v1351_v12 = vld [vmem:[#allocation6 + $0x288] sm:$0xff] }
 0x3bf   :  { %vm1102_vm5 = vcmp.gt.f32.partialorder %v1094_v35, 0.0  ;;  %vm1104_vm6 = vcmp.gt.f32.partialorder %v1096_v13, 0.0  ;;  %vm1106_vm7 = vcmp.gt.f32.partialorder %v1098_v39, 0.0  ;;  %vm1108_vm8 = vcmp.gt.f32.partialorder %v1100_v47, 0.0 }
 0x3c0   :  { %v1110_v16 = vmul.f32 0.2, %v1094_v35  ;;  %v1112_v7 = vmul.f32 0.2, %v1096_v13  ;;  %v1114_v31 = vmul.f32 0.2, %v1098_v39  ;;  %v2656_v0 = vpack.c.bf16 %v1344_v48, %v1342_v40 }
 0x3c1   :  { %v1116_v49 = vmul.f32 0.2, %v1100_v47  ;;  %vm1103_vm9 = vcmp.gt.f32.partialorder %v1095_v41, 0.0  ;;  %vm1105_vm10 = vcmp.gt.f32.partialorder %v1097_v25, 0.0  ;;  %vm1107_vm11 = vcmp.gt.f32.partialorder %v1099_v45, 0.0 }
 0x3c2   :  { %v1118_v51 = vsel %vm1102_vm5, %v1094_v35, %v1110_v16  ;;  %v1120_v52 = vsel %vm1104_vm6, %v1096_v13, %v1112_v7  ;;  %v1122_v54 = vsel %vm1106_vm7, %v1098_v39, %v1114_v31  ;;  %vm1109_vm12 = vcmp.gt.f32.partialorder %v1101_v43, 0.0  ;;  %v1353_v35 = vld [vmem:[#allocation6 + $0x298] sm:$0xff]  ;;  %v1789_v31 = vld [vmem:[%s3755_s7 + $0x80] sm:$0xff] }
 0x3c3   :  { %v1124_v55 = vsel %vm1108_vm8, %v1100_v47, %v1116_v49  ;;  %v1134_v57 = vrot.slane %v1118_v51, 7  ;;  %v1136_v58 = vrot.slane %v1120_v52, 7  ;;  %v1140_v60 = vrot.slane %v1122_v54, 7  ;;  %v1357_v16 = vld [vmem:[#allocation6 + $0x2b8] sm:$0xff]  ;;  %v1790_v49 = vld [vmem:[%s3755_s7 + $0x88] sm:$0xff]  ;;  %v1773_v51 = vld [vmem:[%s3755_s7] sm:$0xff] }
 0x3c4   :  { %v1142_v61 = vrot.slane %v1124_v55, 7  ;;  %v1111_v63 = vmul.f32 0.2, %v1095_v41  ;;  %v1113_v2 = vmul.f32 0.2, %v1097_v25  ;;  %v2658_v33 = vpack.c.bf16 %v1349_v22, %v1347_v28  ;;  %v1774_v55 = vld [vmem:[%s3755_s7 + $0x8] sm:$0xff] }
 0x3c5   :  { %v3425_v4 = vsel %vm92_vm1, %v1134_v57, %v1136_v58  ;;  %1158 = vst [vmem:[#allocation2] sm:$0xfe] %v1134_v57  ;;  %1162 = vst [vmem:[#allocation2 + $0x20] sm:$0x1] %v1136_v58  ;;  %v1115_v5 = vmul.f32 0.2, %v1099_v45  ;;  %v2660_v39 = vpack.c.bf16 %v1348_v32, %v1346_v36  ;;  %v3456_v54 = vpack.c.bf16 %v1790_v49, %v1789_v31 }
 0x3c6   :  { %1164 = vst [vmem:[#allocation2 + $0x30] sm:$0xfe] %v1140_v60  ;;  %v1117_v6 = vmul.f32 0.2, %v1101_v43  ;;  %v3428_v9 = vsel %vm92_vm1, %v1140_v60, %v1142_v61  ;;  %1168 = vst [vmem:[#allocation2 + $0x50] sm:$0x1] %v1142_v61  ;;  %v1119_v46 = vsel %vm1103_vm9, %v1095_v41, %v1111_v63  ;;  %v1121_v42 = vsel %vm1105_vm10, %v1097_v25, %v1113_v2 }
 0x3c7   :  { %v1123_v29 = vsel %vm1107_vm11, %v1099_v45, %v1115_v5  ;;  %v1135_v34 = vrot.slane %v1119_v46, 7  ;;  %v1138_v24 = vrot.slane %v1121_v42, 7  ;;  %v2662_v41 = vpack.c.bf16 %v1353_v35, %v1351_v12  ;;  %v1350_v25 = vld [vmem:[#allocation6 + $0x280] sm:$0xff]  ;;  %v1352_v45 = vld [vmem:[#allocation6 + $0x290] sm:$0xff]  ;;  %v1359_v63 = vld [vmem:[#allocation6 + $0x2c8] sm:$0xff]  ;;  %2775 = vmatprep.subr.bf16.mxu0 %v3456_v54 }
 0x3c8   :  { %v1125_v27 = vsel %vm1109_vm12, %v1101_v43, %v1117_v6  ;;  %v1141_v38 = vrot.slane %v1123_v29, 7  ;;  %v1355_v43 = vld [vmem:[#allocation6 + $0x2a8] sm:$0xff]  ;;  %v2664_v52 = vpack.c.bf16 %v1352_v45, %v1350_v25  ;;  %v1354_v58 = vld [vmem:[#allocation6 + $0x2a0] sm:$0xff]  ;;  %v1356_v60 = vld [vmem:[#allocation6 + $0x2b0] sm:$0xff]  ;;  %v3461_v61 = vpack.c.bf16 %v1774_v55, %v1773_v51 }
 0x3c9   :  { %v1144_v44 = vrot.slane %v1125_v27, 7  ;;  %v3434_v50 = vsel %vm92_vm1, %v1135_v34, %v1138_v24  ;;  %1159 = vst [vmem:[#allocation2 + $0x8] sm:$0xfe] %v1135_v34  ;;  %1163 = vst [vmem:[#allocation2 + $0x28] sm:$0x1] %v1138_v24  ;;  %v2666_v57 = vpack.c.bf16 %v1357_v16, %v1355_v43  ;;  %v1361_v2 = vld [vmem:[#allocation6 + $0x2d8] sm:$0xff]  ;;  %v2668_v5 = vpack.c.bf16 %v1356_v60, %v1354_v58 }
 0x3ca   :  { %1165 = vst [vmem:[#allocation2 + $0x38] sm:$0xfe] %v1141_v38  ;;  %v1210_v47 = vrot.slane %v3434_v50, 1  ;;  %2777 = vmatpush3.bf16.msra.mxu0 %v3461_v61  ;;  %v2670_v6 = vpack.c.bf16 %v1361_v2, %v1359_v63  ;;  %v1358_v46 = vld [vmem:[#allocation6 + $0x2c0] sm:$0xff]  ;;  %v1360_v42 = vld [vmem:[#allocation6 + $0x2d0] sm:$0xff]  ;;  %v1363_v29 = vld [vmem:[#allocation6 + $0x2e8] sm:$0xff]  ;;  %v2684_v40 = vpack.c.bf16 %v1372_v18, %v1370_v19 }
 0x3cb   :  { %v3437_v53 = vsel %vm92_vm1, %v1141_v38, %v1144_v44  ;;  %1169 = vst [vmem:[#allocation2 + $0x58] sm:$0x1] %v1144_v44  ;;  %v1365_v27 = vld [vmem:[#allocation6 + $0x2f8] sm:$0xff]  ;;  %v2672_v34 = vpack.c.bf16 %v1360_v42, %v1358_v46  ;;  %v1362_v38 = vld [vmem:[#allocation6 + $0x2e0] sm:$0xff]  ;;  %v1364_v44 = vld [vmem:[#allocation6 + $0x2f0] sm:$0xff] }
 0x3cc   :  { %v1170_v11 = vld [vmem:[#allocation2] sm:$0xff]  ;;  %v2674_v24 = vpack.c.bf16 %v1365_v27, %v1363_v29  ;;  %v2676_v62 = vpack.c.bf16 %v1364_v44, %v1362_v38  ;;  %v1376_v22 = vld [vmem:[#allocation6 + $0x350] sm:$0xff]  ;;  %v1385_v12 = vld [vmem:[#allocation6 + $0x398] sm:$0xff] }
 0x3cd   :  { %v1174_v26 = vld [vmem:[#allocation2 + $0x30] sm:$0xff]  ;;  %v1374_v28 = vld [vmem:[#allocation6 + $0x340] sm:$0xff]  ;;  %v1387_v25 = vld [vmem:[#allocation6 + $0x3a8] sm:$0xff] }
 0x3ce   :  { %v1378_v36 = vld [vmem:[#allocation6 + $0x360] sm:$0xff]  ;;  %v1380_v32 = vld [vmem:[#allocation6 + $0x370] sm:$0xff]  ;;  %v1389_v45 = vld [vmem:[#allocation6 + $0x3b8] sm:$0xff] }
 0x3cf   :  { %v2692_v35 = vpack.c.bf16 %v1380_v32, %v1378_v36  ;;  %v2698_v16 = vpack.c.bf16 %v1389_v45, %v1387_v25  ;;  %v1388_v31 = vld [vmem:[#allocation6 + $0x3b0] sm:$0xff]  ;;  %v1391_v49 = vld [vmem:[#allocation6 + $0x3c8] sm:$0xff]  ;;  %v1393_v51 = vld [vmem:[#allocation6 + $0x3d8] sm:$0xff]  ;;  %v1217_v45 = vrot.slane %v3428_v9, 1 }
 0x3d0   :  { %v1171_v10 = vld [vmem:[#allocation2 + $0x8] sm:$0xff]  ;;  %v2702_v55 = vpack.c.bf16 %v1393_v51, %v1391_v49  ;;  %v1392_v58 = vld [vmem:[#allocation6 + $0x3d0] sm:$0xff]  ;;  %v1397_v63 = vld [vmem:[#allocation6 + $0x3f8] sm:$0xff] }
 0x3d1   :  { %1526 = vmatprep.mubr.f32.mxu1 %v1171_v10  ;;  %v1175_v30 = vld [vmem:[#allocation2 + $0x38] sm:$0xff]  ;;  %v1179_v23 = vld [vmem:[#allocation2 + $0x8] sm:$0xfe]  ;;  %v1368_v10 = vld [vmem:[#allocation6 + $0x310] sm:$0xff] }
 0x3d2   :  { %1527 = vmatmul.mubr.f32.vlgmr.msra.gmra.mrb[8].mxu1 %v1170_v11  ;;  %v1209_v13 = vrot.slane %v1179_v23, 1  ;;  %v2688_v23 = vpack.c.bf16 %v1376_v22, %v1374_v28  ;;  %v1395_v60 = vld [vmem:[#allocation6 + $0x3e8] sm:$0xff]  ;;  %v1396_v46 = vld [vmem:[#allocation6 + $0x3f0] sm:$0xff]  ;;  %v1401_v29 = vld [vmem:[#allocation6 + $0x418] sm:$0xff] }
 0x3d3   :  { %2649 = vmatpush1.bf16.msra.mxu1 %v2648_v8  ;;  %1532 = vmatprep.mubr.f32.mxu1 %v3434_v50  ;;  %v1366_v8 = vld [vmem:[#allocation6 + $0x300] sm:$0xff]  ;;  %v1399_v42 = vld [vmem:[#allocation6 + $0x408] sm:$0xff]  ;;  %v1404_v18 = vld [vmem:[#allocation6 + $0x430] sm:$0xff] }
 0x3d4   :  { %2651 = vmatprep.subr.bf16.mxu1 %v2650_v14  ;;  %v1211_v7 = vsel %vm165_vm2, %v1209_v13, %v1210_v47  ;;  %v1371_v14 = vld [vmem:[#allocation6 + $0x328] sm:$0xff]  ;;  %v2680_v37 = vpack.c.bf16 %v1368_v10, %v1366_v8  ;;  %v1178_v27 = vld [vmem:[#allocation2] sm:$0xfe]  ;;  %v2710_v38 = vpack.c.bf16 %v1401_v29, %v1399_v42  ;;  %v1180_v10 = vld [vmem:[#allocation2 + $0x20] sm:$0x1] }
 0x3d5   :  { %v2682_v11 = vpack.c.bf16 %v1373_v15, %v1371_v14  ;;  %v1398_v44 = vld [vmem:[#allocation6 + $0x400] sm:$0xff]  ;;  %v1206_v59 = vrot.slane %v1178_v27, 1  ;;  %v1207_v14 = vrot.slane %v3425_v4, 1  ;;  %v1184_v25 = vld [vmem:[#allocation2 + $0x50] sm:$0x1]  ;;  %v1419_v29 = vld [vmem:[#allocation6 + $0x4a8] sm:$0xff] }
 0x3d6   :  { %1533 = vmatmul.mubr.f32.gmra.mrb[10].mxu1 %v3425_v4  ;;  %v2712_v15 = vpack.c.bf16 %v1400_v56, %v1398_v44  ;;  %v1402_v19 = vld [vmem:[#allocation6 + $0x420] sm:$0xff]  ;;  %v1412_v49 = vld [vmem:[#allocation6 + $0x470] sm:$0xff]  ;;  %v1421_v27 = vld [vmem:[#allocation6 + $0x4b8] sm:$0xff] }
 0x3d7   :  { %2653 = vmatpush1.bf16.msra.mxu1 %v2652_v20  ;;  %1538 = vmatprep.mubr.f32.mxu1 %v1175_v30  ;;  %v1375_v20 = vld [vmem:[#allocation6 + $0x348] sm:$0xff]  ;;  %v1406_v32 = vld [vmem:[#allocation6 + $0x440] sm:$0xff]  ;;  %v1420_v56 = vld [vmem:[#allocation6 + $0x4b0] sm:$0xff] }
 0x3d8   :  { %2655 = vmatprep.subr.bf16.mxu1 %v2654_v21  ;;  %v1377_v21 = vld [vmem:[#allocation6 + $0x358] sm:$0xff]  ;;  %v1379_v30 = vld [vmem:[#allocation6 + $0x368] sm:$0xff]  ;;  %v1418_v44 = vld [vmem:[#allocation6 + $0x4a0] sm:$0xff] }
 0x3d9   :  { %v2686_v48 = vpack.c.bf16 %v1377_v21, %v1375_v20  ;;  %v1208_v20 = vsel %vm165_vm2, %v1206_v59, %v1207_v14  ;;  %v1212_v21 = vrot.slane %v1180_v10, 1  ;;  %v1423_v59 = vld [vmem:[#allocation6 + $0x4c8] sm:$0xff]  ;;  %v1422_v10 = vld [vmem:[#allocation6 + $0x4c0] sm:$0xff] }
 0x3da   :  { %1539 = vmatmul.mubr.f32.gmra.mrb[12].mxu1 %v1174_v26  ;;  %v1383_v26 = vld [vmem:[#allocation6 + $0x388] sm:$0xff] }
 0x3db   :  { %2657 = vmatpush1.bf16.msra.mxu1 %v2656_v0  ;;  %1544 = vmatprep.mubr.f32.mxu1 %v3437_v53  ;;  %v1381_v0 = vld [vmem:[#allocation6 + $0x378] sm:$0xff]  ;;  %v2694_v13 = vpack.c.bf16 %v1385_v12, %v1383_v26  ;;  %v1408_v26 = vld [vmem:[#allocation6 + $0x450] sm:$0xff]  ;;  %v1213_v12 = vsel %vm165_vm2, %v1207_v14, %v1212_v21  ;;  %v1431_v21 = vld [vmem:[#allocation6 + $0x508] sm:$0xff] }
 0x3dc   :  { %2659 = vmatprep.subr.bf16.mxu1 %v2658_v33  ;;  %v2690_v33 = vpack.c.bf16 %v1381_v0, %v1379_v30  ;;  %v1182_v30 = vld [vmem:[#allocation2 + $0x30] sm:$0xfe]  ;;  %v2716_v0 = vpack.c.bf16 %v1404_v18, %v1402_v19  ;;  %v1426_v18 = vld [vmem:[#allocation6 + $0x4e0] sm:$0xff] }
 0x3dd   :  { %v1424_v14 = vld [vmem:[#allocation6 + $0x4d0] sm:$0xff] }
 0x3de   :  { %1545 = vmatmul.mubr.f32.gmra.mrb[14].mxu1 %v3428_v9 }
 0x3df   :  { %2661 = vmatpush1.bf16.msra.mxu1 %v2660_v39  ;;  %1615 = vmatprep.mubr.f32.mxu1 %v1211_v7  ;;  %v1382_v39 = vld [vmem:[#allocation6 + $0x380] sm:$0xff] }
 0x3e0   :  { %2663 = vmatprep.subr.bf16.mxu1 %v2662_v41  ;;  %v1384_v41 = vld [vmem:[#allocation6 + $0x390] sm:$0xff]  ;;  %v1386_v7 = vld [vmem:[#allocation6 + $0x3a0] sm:$0xff] }
 0x3e1   :  { %v2696_v43 = vpack.c.bf16 %v1384_v41, %v1382_v39  ;;  %v1413_v39 = vld [vmem:[#allocation6 + $0x478] sm:$0xff] }
 0x3e3   :  { %2665 = vmatpush1.bf16.msra.mxu1 %v2664_v52  ;;  %v2700_v52 = vpack.c.bf16 %v1388_v31, %v1386_v7  ;;  %v1410_v31 = vld [vmem:[#allocation6 + $0x460] sm:$0xff] }
 0x3e4   :  { %2667 = vmatprep.subr.bf16.mxu1 %v2666_v57  ;;  %v1390_v57 = vld [vmem:[#allocation6 + $0x3c0] sm:$0xff] }
 0x3e5   :  { %v2704_v2 = vpack.c.bf16 %v1392_v58, %v1390_v57  ;;  %v1417_v57 = vld [vmem:[#allocation6 + $0x498] sm:$0xff] }
 0x3e7   :  { %2669 = vmatpush1.bf16.msra.mxu1 %v2668_v5  ;;  %v2706_v5 = vpack.c.bf16 %v1397_v63, %v1395_v60  ;;  %v2724_v63 = vpack.c.bf16 %v1412_v49, %v1410_v31  ;;  %v1444_v31 = vld [vmem:[#allocation6 + $0x570] sm:$0xff]  ;;  %v1447_v49 = vld [vmem:[#allocation6 + $0x588] sm:$0xff] }
 0x3e8   :  { %2671 = vmatprep.subr.bf16.mxu1 %v2670_v6  ;;  %v1394_v6 = vld [vmem:[#allocation6 + $0x3e0] sm:$0xff] }
 0x3eb   :  { %2673 = vmatpush1.bf16.msra.mxu1 %v2672_v34  ;;  %v2708_v34 = vpack.c.bf16 %v1396_v46, %v1394_v6  ;;  %v1414_v6 = vld [vmem:[#allocation6 + $0x480] sm:$0xff]  ;;  %v1416_v46 = vld [vmem:[#allocation6 + $0x490] sm:$0xff] }
 0x3ec   :  { %2675 = vmatprep.subr.bf16.mxu1 %v2674_v24  ;;  %v1181_v24 = vld [vmem:[#allocation2 + $0x28] sm:$0x1] }
 0x3ed   :  { %v1214_v8 = vrot.slane %v1181_v24, 1  ;;  %v2728_v24 = vpack.c.bf16 %v1416_v46, %v1414_v6  ;;  %v1450_v46 = vld [vmem:[#allocation6 + $0x5a0] sm:$0xff] }
 0x3ef   :  { %2677 = vmatpush1.bf16.msra.mxu1 %v2676_v62  ;;  %v1403_v62 = vld [vmem:[#allocation6 + $0x428] sm:$0xff]  ;;  %v1215_v28 = vsel %vm165_vm2, %v1210_v47, %v1214_v8 }
 0x3f0   :  { %2679 = vmatprep.subr.bf16.mxu1 %v2678_v3  ;;  %v1405_v3 = vld [vmem:[#allocation6 + $0x438] sm:$0xff] }
 0x3f3   :  { %2681 = vmatpush1.bf16.msra.mxu1 %v2680_v37  ;;  %v1183_v37 = vld [vmem:[#allocation2 + $0x38] sm:$0xfe] }
 0x3f4   :  { %2683 = vmatprep.subr.bf16.mxu1 %v2682_v11  ;;  %v2714_v11 = vpack.c.bf16 %v1405_v3, %v1403_v62  ;;  %v1219_v22 = vrot.slane %v1183_v37, 1  ;;  %v1425_v62 = vld [vmem:[#allocation6 + $0x4d8] sm:$0xff]  ;;  %v2732_v3 = vpack.c.bf16 %v1420_v56, %v1418_v44  ;;  %v1456_v44 = vld [vmem:[#allocation6 + $0x5d0] sm:$0xff]  ;;  %v1459_v56 = vld [vmem:[#allocation6 + $0x5e8] sm:$0xff] }
 0x3f5   :  { %v2734_v8 = vpack.c.bf16 %v1425_v62, %v1423_v59  ;;  %v1429_v37 = vld [vmem:[#allocation6 + $0x4f8] sm:$0xff] }
 0x3f6   :  { %v1461_v59 = vld [vmem:[#allocation6 + $0x5f8] sm:$0xff] }
 0x3f7   :  { %2685 = vmatpush1.bf16.msra.mxu1 %v2684_v40  ;;  %v1407_v40 = vld [vmem:[#allocation6 + $0x448] sm:$0xff] }
 0x3f8   :  { %2687 = vmatprep.subr.bf16.mxu1 %v2686_v48  ;;  %v1409_v48 = vld [vmem:[#allocation6 + $0x458] sm:$0xff] }
 0x3f9   :  { %v2718_v36 = vpack.c.bf16 %v1409_v48, %v1407_v40  ;;  %v1433_v40 = vld [vmem:[#allocation6 + $0x518] sm:$0xff] }
 0x3fb   :  { %2689 = vmatpush1.bf16.msra.mxu1 %v2688_v23  ;;  %v1185_v23 = vld [vmem:[#allocation2 + $0x58] sm:$0x1] }
 0x3fc   :  { %2691 = vmatprep.subr.bf16.mxu1 %v2690_v33  ;;  %v1220_v33 = vrot.slane %v3437_v53, 1  ;;  %v1224_v41 = vrot.slane %v1185_v23, 1  ;;  %v1437_v23 = vld [vmem:[#allocation6 + $0x538] sm:$0xff] }
 0x3fe   :  { %v1221_v47 = vsel %vm165_vm2, %v1219_v22, %v1220_v33  ;;  %v1225_v58 = vsel %vm165_vm2, %v1220_v33, %v1224_v41  ;;  %v1430_v22 = vld [vmem:[#allocation6 + $0x500] sm:$0xff]  ;;  %v1440_v41 = vld [vmem:[#allocation6 + $0x550] sm:$0xff] }
 0x3ff   :  { %2693 = vmatpush1.bf16.msra.mxu1 %v2692_v35  ;;  %v1216_v35 = vrot.slane %v1182_v30, 1  ;;  %v1432_v30 = vld [vmem:[#allocation6 + $0x510] sm:$0xff] }
 0x400   :  { %2695 = vmatprep.subr.bf16.mxu1 %v2694_v13  ;;  %v1411_v13 = vld [vmem:[#allocation6 + $0x468] sm:$0xff]  ;;  %v2744_v33 = vpack.c.bf16 %v1432_v30, %v1430_v22  ;;  %v1190_v30 = vld [vmem:[#allocation2 + $0x30] sm:$0xfc] }
 0x401   :  { %v2722_v7 = vpack.c.bf16 %v1413_v39, %v1411_v13  ;;  %v1218_v51 = vsel %vm165_vm2, %v1216_v35, %v1217_v45  ;;  %v1441_v35 = vld [vmem:[#allocation6 + $0x558] sm:$0xff] }
 0x403   :  { %2697 = vmatpush1.bf16.msra.mxu1 %v2696_v43  ;;  %v2720_v43 = vpack.c.bf16 %v1408_v26, %v1406_v32  ;;  %v1434_v32 = vld [vmem:[#allocation6 + $0x520] sm:$0xff]  ;;  %v1436_v26 = vld [vmem:[#allocation6 + $0x530] sm:$0xff] }
 0x404   :  { %2699 = vmatprep.subr.bf16.mxu1 %v2698_v16  ;;  %v1187_v16 = vld [vmem:[#allocation2 + $0x8] sm:$0xfc]  ;;  %v2748_v13 = vpack.c.bf16 %v1436_v26, %v1434_v32  ;;  %v1192_v26 = vld [vmem:[#allocation2 + $0x50] sm:$0x3] }
 0x405   :  { %v1245_v60 = vrot.slane %v1187_v16, 2 }
 0x407   :  { %2701 = vmatpush1.bf16.msra.mxu1 %v2700_v52  ;;  %v1222_v52 = vrot.slane %v1184_v25, 1  ;;  %v1443_v25 = vld [vmem:[#allocation6 + $0x568] sm:$0xff] }
 0x408   :  { %2703 = vmatprep.subr.bf16.mxu1 %v2702_v55  ;;  %v1415_v55 = vld [vmem:[#allocation6 + $0x488] sm:$0xff] }
 0x409   :  { %v1223_v42 = vsel %vm165_vm2, %v1217_v45, %v1222_v52  ;;  %v1445_v45 = vld [vmem:[#allocation6 + $0x578] sm:$0xff] }
 0x40a   :  { %v2754_v16 = vpack.c.bf16 %v1445_v45, %v1443_v25  ;;  %v1793_v45 = vld [vmem:[%s3755_s7 + $0xa0] sm:$0xff] }
 0x40b   :  { %2705 = vmatpush1.bf16.msra.mxu1 %v2704_v2  ;;  %v1246_v2 = vrot.slane %v3434_v50, 2 }
 0x40c   :  { %2707 = vmatprep.subr.bf16.mxu1 %v2706_v5  ;;  %v2726_v5 = vpack.c.bf16 %v1417_v57, %v1415_v55  ;;  %v1446_v57 = vld [vmem:[#allocation6 + $0x580] sm:$0xff] }
 0x40f   :  { %2709 = vmatpush1.bf16.msra.mxu1 %v2708_v34  ;;  %v1247_v34 = vsel %vm202_vm3, %v1245_v60, %v1246_v2  ;;  %v1451_v60 = vld [vmem:[#allocation6 + $0x5a8] sm:$0xff] }
 0x410   :  { %2711 = vmatprep.subr.bf16.mxu1 %v2710_v38  ;;  %v2730_v38 = vpack.c.bf16 %v1421_v27, %v1419_v29  ;;  %v1455_v29 = vld [vmem:[#allocation6 + $0x5c8] sm:$0xff]  ;;  %v1457_v27 = vld [vmem:[#allocation6 + $0x5d8] sm:$0xff] }
 0x412   :  { %1616 = vmatmul.mubr.f32.vlgmr.msra.gmra.mrb[8].mxu1 %v1208_v20  ;;  %v1428_v20 = vld [vmem:[#allocation6 + $0x4f0] sm:$0xff] }
 0x413   :  { %1621 = vmatprep.mubr.f32.mxu1 %v1215_v28  ;;  %2713 = vmatpush1.bf16.msra.mxu1 %v2712_v15  ;;  %v1427_v15 = vld [vmem:[#allocation6 + $0x4e8] sm:$0xff]  ;;  %v2740_v48 = vpack.c.bf16 %v1428_v20, %v1426_v18  ;;  %v2742_v28 = vpack.c.bf16 %v1433_v40, %v1431_v21  ;;  %v1188_v18 = vld [vmem:[#allocation2 + $0x20] sm:$0x3]  ;;  %v1243_v20 = vrot.slane %v3425_v4, 2  ;;  %v1191_v21 = vld [vmem:[#allocation2 + $0x38] sm:$0xfc] }
 0x414   :  { %2715 = vmatprep.subr.bf16.mxu1 %v2714_v11  ;;  %v2736_v11 = vpack.c.bf16 %v1424_v14, %v1422_v10  ;;  %v2738_v19 = vpack.c.bf16 %v1429_v37, %v1427_v15  ;;  %v1460_v10 = vld [vmem:[#allocation6 + $0x5f0] sm:$0xff]  ;;  %v1186_v14 = vld [vmem:[#allocation2] sm:$0xfc]  ;;  %v1189_v37 = vld [vmem:[#allocation2 + $0x28] sm:$0x3]  ;;  %v1255_v22 = vrot.slane %v1191_v21, 2 }
 0x416   :  { %1622 = vmatmul.mubr.f32.gmra.mrb[10].mxu1 %v1213_v12  ;;  %v1439_v12 = vld [vmem:[#allocation6 + $0x548] sm:$0xff] }
 0x417   :  { %1627 = vmatprep.mubr.f32.mxu1 %v1221_v47  ;;  %2717 = vmatpush1.bf16.msra.mxu1 %v2716_v0  ;;  %v1435_v0 = vld [vmem:[#allocation6 + $0x528] sm:$0xff]  ;;  %v2750_v39 = vpack.c.bf16 %v1441_v35, %v1439_v12  ;;  %v1438_v47 = vld [vmem:[#allocation6 + $0x540] sm:$0xff]  ;;  %v1253_v12 = vrot.slane %v3428_v9, 2 }
 0x418   :  { %2719 = vmatprep.subr.bf16.mxu1 %v2718_v36  ;;  %v2746_v36 = vpack.c.bf16 %v1437_v23, %v1435_v0  ;;  %v1193_v0 = vld [vmem:[#allocation2 + $0x58] sm:$0x3]  ;;  %v1256_v23 = vrot.slane %v3437_v53, 2 }
 0x419   :  { %v1260_v32 = vrot.slane %v1193_v0, 2 }
 0x41a   :  { %1628 = vmatmul.mubr.f32.gmra.mrb[12].mxu1 %v1218_v51  ;;  %v1449_v51 = vld [vmem:[#allocation6 + $0x598] sm:$0xff]  ;;  %v1257_v4 = vsel %vm202_vm3, %v1255_v22, %v1256_v23 }
 0x41b   :  { %1633 = vmatprep.mubr.f32.mxu1 %v1225_v58  ;;  %2721 = vmatpush1.bf16.msra.mxu1 %v2720_v43  ;;  %v2752_v43 = vpack.c.bf16 %v1440_v41, %v1438_v47  ;;  %v2758_v55 = vpack.c.bf16 %v1449_v51, %v1447_v49  ;;  %v1448_v58 = vld [vmem:[#allocation6 + $0x590] sm:$0xff]  ;;  %v1261_v35 = vsel %vm202_vm3, %v1256_v23, %v1260_v32  ;;  %v1776_v41 = vld [vmem:[%s3755_s7 + $0x18] sm:$0xff] }
 0x41c   :  { %2723 = vmatprep.subr.bf16.mxu1 %v2722_v7  ;;  %v1442_v7 = vld [vmem:[#allocation6 + $0x560] sm:$0xff]  ;;  %v1775_v47 = vld [vmem:[%s3755_s7 + $0x10] sm:$0xff] }
 0x41d   :  { %v2756_v52 = vpack.c.bf16 %v1444_v31, %v1442_v7  ;;  %v3507_v25 = vpack.c.bf16 %v1776_v41, %v1775_v47  ;;  %v1777_v7 = vld [vmem:[%s3755_s7 + $0x20] sm:$0xff]  ;;  %v1778_v31 = vld [vmem:[%s3755_s7 + $0x28] sm:$0xff]  ;;  %v1795_v51 = vld [vmem:[%s3755_s7 + $0xb0] sm:$0xff] }
 0x41e   :  { %1634 = vmatmul.mubr.f32.gmra.mrb[14].mxu1 %v1223_v42  ;;  %v1452_v42 = vld [vmem:[#allocation6 + $0x5b0] sm:$0xff]  ;;  %v3525_v49 = vpack.c.bf16 %v1778_v31, %v1777_v7 }
 0x41f   :  { %2725 = vmatpush1.bf16.msra.mxu1 %v2724_v63  ;;  %1704 = vmatprep.mubr.f32.mxu1 %v1247_v34  ;;  %v1453_v63 = vld [vmem:[#allocation6 + $0x5b8] sm:$0xff]  ;;  %v2764_v34 = vpack.c.bf16 %v1452_v42, %v1450_v46  ;;  %v1781_v46 = vld [vmem:[%s3755_s7 + $0x40] sm:$0xff]  ;;  %v1782_v42 = vld [vmem:[%s3755_s7 + $0x48] sm:$0xff] }
 0x420   :  { %2727 = vmatprep.subr.bf16.mxu1 %v2726_v5  ;;  %v2760_v5 = vpack.c.bf16 %v1448_v58, %v1446_v57  ;;  %v2762_v6 = vpack.c.bf16 %v1453_v63, %v1451_v60  ;;  %v1779_v57 = vld [vmem:[%s3755_s7 + $0x30] sm:$0xff]  ;;  %v1780_v58 = vld [vmem:[%s3755_s7 + $0x38] sm:$0xff]  ;;  %v1797_v63 = vld [vmem:[%s3755_s7 + $0xc0] sm:$0xff] }
 0x421   :  { %v3543_v60 = vpack.c.bf16 %v1780_v58, %v1779_v57 }
 0x423   :  { %2729 = vmatpush1.bf16.msra.mxu1 %v2728_v24  ;;  %v2766_v24 = vpack.c.bf16 %v1457_v27, %v1455_v29  ;;  %v3561_v29 = vpack.c.bf16 %v1782_v42, %v1781_v46  ;;  %v1799_v27 = vld [vmem:[%s3755_s7 + $0xd0] sm:$0xff] }
 0x424   :  { %2731 = vmatprep.subr.bf16.mxu1 %v2730_v38  ;;  %v1454_v38 = vld [vmem:[#allocation6 + $0x5c0] sm:$0xff] }
 0x425   :  { %v2768_v62 = vpack.c.bf16 %v1456_v44, %v1454_v38  ;;  %v1783_v38 = vld [vmem:[%s3755_s7 + $0x50] sm:$0xff]  ;;  %v1784_v44 = vld [vmem:[%s3755_s7 + $0x58] sm:$0xff] }
 0x427   :  { %2733 = vmatpush1.bf16.msra.mxu1 %v2732_v3  ;;  %v2770_v3 = vpack.c.bf16 %v1461_v59, %v1459_v56  ;;  %v3579_v56 = vpack.c.bf16 %v1784_v44, %v1783_v38  ;;  %v1801_v59 = vld [vmem:[%s3755_s7 + $0xe0] sm:$0xff] }
 0x428   :  { %2735 = vmatprep.subr.bf16.mxu1 %v2734_v8  ;;  %v1458_v8 = vld [vmem:[#allocation6 + $0x5e0] sm:$0xff] }
 0x429   :  { %v2772_v15 = vpack.c.bf16 %v1460_v10, %v1458_v8  ;;  %v1785_v8 = vld [vmem:[%s3755_s7 + $0x60] sm:$0xff]  ;;  %v1786_v10 = vld [vmem:[%s3755_s7 + $0x68] sm:$0xff] }
 0x42b   :  { %2737 = vmatpush1.bf16.msra.mxu1 %v2736_v11  ;;  %v1242_v11 = vrot.slane %v1186_v14, 2  ;;  %v3597_v14 = vpack.c.bf16 %v1786_v10, %v1785_v8 }
 0x42c   :  { %2739 = vmatprep.subr.bf16.mxu1 %v2738_v19  ;;  %v1250_v19 = vrot.slane %v1189_v37, 2  ;;  %v1804_v37 = vld [vmem:[%s3755_s7 + $0xf8] sm:$0xff] }
 0x42d   :  { %v1244_v40 = vsel %vm202_vm3, %v1242_v11, %v1243_v20  ;;  %v1787_v11 = vld [vmem:[%s3755_s7 + $0x70] sm:$0xff] }
 0x42f   :  { %2741 = vmatpush1.bf16.msra.mxu1 %v2740_v48  ;;  %v1248_v48 = vrot.slane %v1188_v18, 2  ;;  %v1788_v18 = vld [vmem:[%s3755_s7 + $0x78] sm:$0xff] }
 0x430   :  { %2743 = vmatprep.subr.bf16.mxu1 %v2742_v28  ;;  %v1251_v28 = vsel %vm202_vm3, %v1246_v2, %v1250_v19  ;;  %v1258_v2 = vrot.slane %v1192_v26, 2 }
 0x432   :  { %v1259_v53 = vsel %vm202_vm3, %v1253_v12, %v1258_v2 }
 0x433   :  { %2745 = vmatpush1.bf16.msra.mxu1 %v2744_v33  ;;  %v1249_v33 = vsel %vm202_vm3, %v1243_v20, %v1248_v48  ;;  %v3615_v20 = vpack.c.bf16 %v1788_v18, %v1787_v11 }
 0x434   :  { %2747 = vmatprep.subr.bf16.mxu1 %v2746_v36  ;;  %v1252_v36 = vrot.slane %v1190_v30, 2 }
 0x436   :  { %v1254_v50 = vsel %vm202_vm3, %v1252_v36, %v1253_v12 }
 0x437   :  { %2749 = vmatpush1.bf16.msra.mxu1 %v2748_v13  ;;  %v1791_v13 = vld [vmem:[%s3755_s7 + $0x90] sm:$0xff] }
 0x438   :  { %2751 = vmatprep.subr.bf16.mxu1 %v2750_v39  ;;  %v1792_v39 = vld [vmem:[%s3755_s7 + $0x98] sm:$0xff] }
 0x439   :  { %v3499_v9 = vpack.c.bf16 %v1792_v39, %v1791_v13 }
 0x43b   :  { %2753 = vmatpush1.bf16.msra.mxu1 %v2752_v43  ;;  %2779 = vmatprep.subr.bf16.mxu0 %v3499_v9  ;;  %v1794_v43 = vld [vmem:[%s3755_s7 + $0xa8] sm:$0xff] }
 0x43c   :  { %2755 = vmatprep.subr.bf16.mxu1 %v2754_v16  ;;  %2781 = vmatpush3.bf16.msra.mxu0 %v3507_v25  ;;  %v3517_v16 = vpack.c.bf16 %v1794_v43, %v1793_v45 }
 0x43e   :  { %2783 = vmatprep.subr.bf16.mxu0 %v3517_v16 }
 0x43f   :  { %2757 = vmatpush1.bf16.msra.mxu1 %v2756_v52  ;;  %v1796_v52 = vld [vmem:[%s3755_s7 + $0xb8] sm:$0xff] }
 0x440   :  { %2759 = vmatprep.subr.bf16.mxu1 %v2758_v55  ;;  %2785 = vmatpush3.bf16.msra.mxu0 %v3525_v49  ;;  %v3535_v55 = vpack.c.bf16 %v1796_v52, %v1795_v51 }
 0x442   :  { %2787 = vmatprep.subr.bf16.mxu0 %v3535_v55 }
 0x443   :  { %2761 = vmatpush1.bf16.msra.mxu1 %v2760_v5  ;;  %v1798_v5 = vld [vmem:[%s3755_s7 + $0xc8] sm:$0xff] }
 0x444   :  { %2763 = vmatprep.subr.bf16.mxu1 %v2762_v6  ;;  %2789 = vmatpush3.bf16.msra.mxu0 %v3543_v60  ;;  %v3553_v6 = vpack.c.bf16 %v1798_v5, %v1797_v63 }
 0x446   :  { %2791 = vmatprep.subr.bf16.mxu0 %v3553_v6 }
 0x447   :  { %2765 = vmatpush1.bf16.msra.mxu1 %v2764_v34  ;;  %v1800_v34 = vld [vmem:[%s3755_s7 + $0xd8] sm:$0xff] }
 0x448   :  { %2767 = vmatprep.subr.bf16.mxu1 %v2766_v24  ;;  %2793 = vmatpush3.bf16.msra.mxu0 %v3561_v29  ;;  %v3571_v24 = vpack.c.bf16 %v1800_v34, %v1799_v27 }
 0x44a   :  { %2795 = vmatprep.subr.bf16.mxu0 %v3571_v24 }
 0x44b   :  { %2769 = vmatpush1.bf16.msra.mxu1 %v2768_v62  ;;  %v1802_v62 = vld [vmem:[%s3755_s7 + $0xe8] sm:$0xff] }
 0x44c   :  { %2771 = vmatprep.subr.bf16.mxu1 %v2770_v3  ;;  %2797 = vmatpush3.bf16.msra.mxu0 %v3579_v56  ;;  %v3589_v3 = vpack.c.bf16 %v1802_v62, %v1801_v59 }
 0x44e   :  { %2799 = vmatprep.subr.bf16.mxu0 %v3589_v3 }
 0x44f   :  { %2773 = vmatpush1.bf16.msra.mxu1 %v2772_v15  ;;  %v1803_v15 = vld [vmem:[%s3755_s7 + $0xf0] sm:$0xff] }
 0x450   :  { %2801 = vmatpush3.bf16.msra.mxu0 %v3597_v14  ;;  %v3610_v19 = vpack.c.bf16 %v1804_v37, %v1803_v15 }
 0x452   :  { %1705 = vmatmul.mubr.f32.vlgmr.msra.gmra.mrb[8].mxu1 %v1244_v40  ;;  %2803 = vmatprep.subr.bf16.mxu0 %v3610_v19 }
 0x453   :  { %1710 = vmatprep.mubr.f32.mxu1 %v1251_v28 }
 0x454   :  { %2805 = vmatpush3.bf16.msra.mxu0 %v3615_v20 }
 0x455   :  { %2807 = vmatprep.subr.bf16.mxu0 %v3456_v54 }
 0x456   :  { %1711 = vmatmul.mubr.f32.gmra.mrb[10].mxu1 %v1249_v33 }
 0x457   :  { %1716 = vmatprep.mubr.f32.mxu1 %v1257_v4 }
 0x45a   :  { %1717 = vmatmul.mubr.f32.gmra.mrb[12].mxu1 %v1254_v50 }
 0x45b   :  { %1722 = vmatprep.mubr.f32.mxu1 %v1261_v35 }
 0x45e   :  { %1723 = vmatmul.mubr.f32.gmra.mrb[14].mxu1 %v1259_v53 }
 0x525   :  { %v3620_v21 = vpop.f32.mrb[8].mxu1 }
 0x526   :  { %v3622_v40 = vpop.f32.mrb[9].mxu1  ;;  %v1747_v28 = vmul.f32 %v3620_v21, %v3620_v21 }
 0x527   :  { %v1748_v54 = vmul.f32 %v3622_v40, %v3622_v40 }
 0x529   :  { %v3624_v48 = vpop.f32.mrb[10].mxu1 }
 0x52a   :  { %v1729_v22 = vadd.f32 %v3624_v48, %v3620_v21  ;;  %v1749_v30 = vmul.f32 %v3624_v48, %v3624_v48  ;;  %v3632_v0 = vpop.f32.mrb[11].mxu1 }
 0x52b   :  { %v1738_v23 = vadd.f32 %v3632_v0, %v3622_v40  ;;  %v1750_v33 = vmul.f32 %v3632_v0, %v3632_v0 }
 0x52c   :  { %v1755_v36 = vadd.f32 %v1749_v30, %v1747_v28 }
 0x52d   :  { %v1764_v4 = vadd.f32 %v1750_v33, %v1748_v54  ;;  %v3640_v32 = vpop.f32.mrb[12].mxu1 }
 0x52e   :  { %v1730_v26 = vadd.f32 %v1729_v22, %v3640_v32  ;;  %v1751_v12 = vmul.f32 %v3640_v32, %v3640_v32  ;;  %v3645_v50 = vpop.f32.mrb[13].mxu1 }
 0x52f   :  { %v1739_v2 = vadd.f32 %v1738_v23, %v3645_v50  ;;  %v1752_v35 = vmul.f32 %v3645_v50, %v3645_v50 }
 0x530   :  { %v1756_v53 = vadd.f32 %v1755_v36, %v1751_v12 }
 0x531   :  { %v1765_v13 = vadd.f32 %v1764_v4, %v1752_v35  ;;  %v3650_v39 = vpop.f32.mrb[14].mxu1  ;;  %v1949_v4 = vld [vmem:[%s3753_s5] sm:$0x1]  ;;  %s2973_s5 = smov [#allocation8]  }
 0x532   :  { %v1731_v47 = vadd.f32 %v1730_v26, %v3650_v39  ;;  %v1753_v41 = vmul.f32 %v3650_v39, %v3650_v39  ;;  %v3655_v45 = vpop.f32.mrb[15].mxu1 }
 0x533   :  { %v1740_v43 = vadd.f32 %v1739_v2, %v3655_v45  ;;  %v1754_v7 = vmul.f32 %v3655_v45, %v3655_v45  ;;  %v1953_v2 = vld [vmem:[%s3754_s6] sm:$0x1]  ;;  %s2161_s6 = sshll.u32 %s2973_s5, 4  ;;  %s2162_s6 = int_to_ptr.vmem [resolvable:$true] %s2161_s6 }
 0x534   :  { %v1732_v31 = vrot.slane %v1731_v47, 4  ;;  %v1757_v51 = vadd.f32 %v1756_v53, %v1753_v41  ;;  %s2940_s17 = scalar_lea.vmem %s2162_s6, 1024  ;;  %p2945_p3 = scmp.lt.s32.totalorder %s2162_s6, %s2162_s6 }
 0x535   :  { %v1741_v52 = vrot.slane %v1740_v43, 4  ;;  %v1766_v57 = vadd.f32 %v1765_v13, %v1754_v7  ;;  %p2941_p2 = scmp.ne.s32.totalorder %s2162_s6, %s2940_s17  ;;  %p2946_p4 = scmp.lt.s32.totalorder %s2940_s17, %s2940_s17 }
 0x536   :  { %v1733_v58 = vadd.f32 %v1732_v31, %v1731_v47  ;;  %v1758_v18 = vrot.slane %v1757_v51, 4 }
 0x537   :  { %v1742_v63 = vadd.f32 %v1741_v52, %v1740_v43  ;;  %v1767_v5 = vrot.slane %v1766_v57, 4  ;;  %p2947_p5 = por %p2946_p4, %p2945_p3 }
 0x538   :  { %v1734_v46 = vrot.slane %v1733_v58, 2  ;;  %v1759_v28 = vadd.f32 %v1758_v18, %v1757_v51 }
 0x539   :  { %v1743_v42 = vrot.slane %v1742_v63, 2  ;;  %v1768_v27 = vadd.f32 %v1767_v5, %v1766_v57  ;;  %p2948_p6 = pnand %p2947_p5, %p2941_p2 }
 0x53a   :  { %v1735_v34 = vadd.f32 %v1734_v46, %v1733_v58 }
 0x53b   :  { %v1744_v38 = vadd.f32 %v1743_v42, %v1742_v63  ;;  %v1769_v44 = vrot.slane %v1768_v27, 2 }
 0x53c   :  { %v1736_v59 = vrot.slane %v1735_v34, 1 }
 0x53d   :  { %v1745_v62 = vrot.slane %v1744_v38, 1  ;;  %v1770_v8 = vadd.f32 %v1769_v44, %v1768_v27  ;;  %v2889_v44 = vld [vmem:[%s3748_s0 + $0x10] sm:$0xff] }
 0x53e   :  { %v1737_v37 = vadd.f32 %v1736_v59, %v1735_v34  ;;  %v2890_v59 = vld [vmem:[%s3748_s0 + $0x20] sm:$0xff] }
 0x53f   :  { %v1746_v10 = vadd.f32 %v1745_v62, %v1744_v38  ;;  %v1771_v15 = vrot.slane %v1770_v8, 1 }
 0x541   :  { %1869 = vmatprep.mubr.f32.mxu0 %v1746_v10  ;;  %v1772_v11 = vadd.f32 %v1771_v15, %v1770_v8  ;;  %v2891_v8 = vld [vmem:[%s3748_s0 + $0x30] sm:$0xff]  ;;  %v2892_v15 = vld [vmem:[%s3748_s0 + $0x8] sm:$0xff] }
 0x542   :  { %1870 = vmatmul.mubr.f32.vlgmr.msra.gmra.mrb[8].mxu0 %v1737_v37 }
 0x543   :  { %2809 = vmatpush3.bf16.msra.mxu0 %v3461_v61  ;;  %1939 = vmatprep.mubr.f32.mxu0 %v1772_v11  ;;  %v1760_v61 = vrot.slane %v1759_v28, 2  ;;  %v2893_v11 = vld [vmem:[%s3748_s0 + $0x18] sm:$0xff] }
 0x544   :  { %2811 = vmatprep.subr.bf16.mxu0 %v3499_v9 }
 0x545   :  { %v1761_v9 = vadd.f32 %v1760_v61, %v1759_v28  ;;  %v2894_v28 = vld [vmem:[%s3748_s0 + $0x28] sm:$0xff] }
 0x547   :  { %2813 = vmatpush3.bf16.msra.mxu0 %v3507_v25  ;;  %v1762_v25 = vrot.slane %v1761_v9, 1 }
 0x548   :  { %2815 = vmatprep.subr.bf16.mxu0 %v3517_v16 }
 0x549   :  { %v1763_v16 = vadd.f32 %v1762_v25, %v1761_v9  ;;  %v2895_v9 = vld [vmem:[%s3748_s0 + $0x38] sm:$0xff] }
 0x54b   :  { %2817 = vmatpush3.bf16.msra.mxu0 %v3525_v49  ;;  %v1957_v49 = vld [vmem:[%s3756_s8 + $0x8] sm:$0xff] }
 0x54c   :  { %2819 = vmatprep.subr.bf16.mxu0 %v3535_v55  ;;  %v1959_v55 = vld [vmem:[%s3756_s8 + $0x18] sm:$0xff] }
 0x54f   :  { %2821 = vmatpush3.bf16.msra.mxu0 %v3543_v60  ;;  %v1956_v60 = vld [vmem:[%s3756_s8] sm:$0xff] }
 0x550   :  { %2823 = vmatprep.subr.bf16.mxu0 %v3553_v6  ;;  %v2838_v6 = vpack.c.bf16 %v1959_v55, %v1957_v49 }
 0x553   :  { %2825 = vmatpush3.bf16.msra.mxu0 %v3561_v29  ;;  %v1958_v29 = vld [vmem:[%s3756_s8 + $0x10] sm:$0xff] }
 0x554   :  { %2827 = vmatprep.subr.bf16.mxu0 %v3571_v24  ;;  %v2840_v24 = vpack.c.bf16 %v1958_v29, %v1956_v60 }
 0x557   :  { %2829 = vmatpush3.bf16.msra.mxu0 %v3579_v56 }
 0x558   :  { %2831 = vmatprep.subr.bf16.mxu0 %v3589_v3 }
 0x55b   :  { %2833 = vmatpush3.bf16.msra.mxu0 %v3597_v14 }
 0x55c   :  { %2835 = vmatprep.subr.bf16.mxu0 %v3610_v19 }
 0x55f   :  { %2837 = vmatpush3.bf16.msra.mxu0 %v3615_v20 }
 0x560   :  { %2839 = vmatprep.subr.bf16.mxu0 %v2838_v6 }
 0x562   :  { %1940 = vmatmul.mubr.f32.vlgmr.msra.gmra.mrb[10].mxu0 %v1763_v16 }
 0x563   :  { %2027 = vmatprep.mubr.f32.mxu0 %v2972_v1  ;;  %2841 = vmatpush1.bf16.msra.mxu0 %v2840_v24 }
 0x564   :  { %2843 = vmatprep.subr.bf16.mxu0 %v2838_v6 }
 0x615   :  { %v2280_v56 = vpop.f32.mrb[8].mxu0 }
 0x616   :  { %v2281_v3 = vpop.f32.mrb[9].mxu0 }
 0x617   :  { %v2282_v14 = vadd.f32 %v2281_v3, %v2280_v56 }
 0x619   :  { %v1945_v19 = vmul.f32 0.001953125, %v2282_v14 }
 0x61b   :  { %v1947_v54 = vmul.f32 %v1945_v19, %v1945_v19 }
 0x635   :  { %v2315_v20 = vpop.f32.mrb[10].mxu0 }
 0x636   :  { %v2316_v22 = vpop.f32.mrb[11].mxu0 }
 0x637   :  { %v2317_v30 = vadd.f32 %v2316_v22, %v2315_v20 }
 0x639   :  { %v1946_v23 = vmul.f32 0.001953125, %v2317_v30 }
 0x63b   :  { %v1948_v33 = vsub.f32 %v1946_v23, %v1947_v54 }
 0x63d   :  { %v1950_v36 = vadd.f32 1e-05, %v1948_v33 }
 0x63f   :  { %2886 = vrsqrt.f32 %v1950_v36 }
 0x649   :  { %v2887_v26 = vpop.eup %2886 }
 0x64a   :  { %v1952_v12 = vmul.f32 %v2887_v26, %v1949_v4 }
 0x64c   :  { %2176 = vmatmul.mubr.msk.f32.vlgmr.msra.gmra.mrb[12].mxu0 %vm921_vm4, %v1952_v12  ;;  %v1954_v35 = vmul.f32 %v1952_v12, %v1945_v19 }
 0x64d   :  { %2845 = vmatpush1.bf16.msra.mxu0 %v2840_v24  ;;  %2101 = vmatprep.mubr.f32.mxu0 %v2972_v1 }
 0x64e   :  { %v1955_v53 = vsub.f32 %v1953_v2, %v1954_v35 }
 0x650   :  { %2177 = vmatmul.mubr.msk.f32.vlgmr.msra.gmra.mrb[14].mxu0 %vm921_vm4, %v1955_v53 }
 0x71f   :  { %v2029_v13 = vpop.f32.mrb[12].mxu0 }
 0x720   :  { %v2111_v47 = vrot.slane %v2029_v13, %v3410_v17  ;;  %v2031_v41 = vpop.f32.mrb[13].mxu0 }
 0x721   :  { %v2115_v43 = vrot.slane %v2031_v41, %v3410_v17 }
 0x722   :  { %v2116_v7 = vmul.f32 %v2111_v47, %v3620_v21  ;;  %v2118_v31 = vmul.f32 %v2111_v47, %v3624_v48  ;;  %v2120_v51 = vmul.f32 %v2111_v47, %v3640_v32  ;;  %v2122_v52 = vmul.f32 %v2111_v47, %v3650_v39 }
 0x723   :  { %v2117_v57 = vmul.f32 %v2115_v43, %v3622_v40  ;;  %v2119_v1 = vmul.f32 %v2115_v43, %v3632_v0  ;;  %v2121_v58 = vmul.f32 %v2115_v43, %v3645_v50  ;;  %v2123_v63 = vmul.f32 %v2115_v43, %v3655_v45  ;;  %v2103_v5 = vpop.f32.mrb[14].mxu0  ;;  %v2888_v50 = vld [vmem:[%s3748_s0] sm:$0xff] }
 0x724   :  { %v2127_v46 = vrot.slane %v2103_v5, %v3410_v17  ;;  %v2105_v42 = vpop.f32.mrb[15].mxu0 }
 0x725   :  { %v2131_v21 = vrot.slane %v2105_v42, %v3410_v17 }
 0x726   :  { %v2132_v27 = vadd.f32 %v2127_v46, %v2116_v7  ;;  %v2134_v48 = vadd.f32 %v2127_v46, %v2118_v31  ;;  %v2136_v34 = vadd.f32 %v2127_v46, %v2120_v51  ;;  %v2138_v32 = vadd.f32 %v2127_v46, %v2122_v52 }
 0x727   :  { %v2133_v39 = vadd.f32 %v2131_v21, %v2117_v57  ;;  %v2135_v40 = vadd.f32 %v2131_v21, %v2119_v1  ;;  %v2137_v38 = vadd.f32 %v2131_v21, %v2121_v58  ;;  %v2139_v0 = vadd.f32 %v2131_v21, %v2123_v63 }
 0x728   :  { %v2140_v45 = vadd.f32 %v2888_v50, %v2132_v27  ;;  %v2142_v17 = vadd.f32 %v2889_v44, %v2134_v48  ;;  %v2144_v62 = vadd.f32 %v2890_v59, %v2136_v34  ;;  %v2146_v10 = vadd.f32 %v2891_v8, %v2138_v32 }
 0x729   :  { %v2141_v37 = vadd.f32 %v2892_v15, %v2133_v39  ;;  %v2143_v18 = vadd.f32 %v2893_v11, %v2135_v40  ;;  %v2145_v61 = vadd.f32 %v2894_v28, %v2137_v38  ;;  %v2147_v25 = vadd.f32 %v2895_v9, %v2139_v0 }
 0x72a   :  { %2148 = vst [vmem:[#allocation8] sm:$0xff] %v2140_v45  ;;  %2150 = vst [vmem:[#allocation8 + $0x10] sm:$0xff] %v2142_v17 }
 0x72b   :  { %2152 = vst [vmem:[#allocation8 + $0x20] sm:$0xff] %v2144_v62  ;;  %2154 = vst [vmem:[#allocation8 + $0x30] sm:$0xff] %v2146_v10 }
 0x72c   :  { %2149 = vst [vmem:[#allocation8 + $0x8] sm:$0xff] %v2141_v37  ;;  %2151 = vst [vmem:[#allocation8 + $0x18] sm:$0xff] %v2143_v18 }
 0x72d   :  { %2153 = vst [vmem:[#allocation8 + $0x28] sm:$0xff] %v2145_v61  ;;  %2155 = vst [vmem:[#allocation8 + $0x38] sm:$0xff] %v2147_v25 }
 0x72e   :  { %2951 = shalt.err (!%p2948_p6)
}
 0x72f   :  { %s2952_s0 = scalar_lea.hbm %s3757_s9, 1024 }
 0x730   :  { %p2953_p7 = scmp.ne.s32.totalorder %s3757_s9, %s2952_s0  ;;  %p2956_p8 = scmp.lt.u32.totalorder %s2952_s0, %s3757_s9 }
 0x732   :  { %p2958_p9 = pnand %p2956_p8, %p2953_p7 }
 0x734   :  { %2961 = shalt.err (!%p2958_p9)
}
 0x735   :  { %2167 = dma.vmem_to_hbm [thread:$0]  %s2162_s6, 1024, %s3757_s9, [#allocation5], %s2969_s19, %s2969_s19, %s2970_s20  }
 0x736   :  { %2966 = dma.done.wait [#allocation5], 1024  }
 0x737   :  { %2967 = vsyncadd [#allocation5], 4294966272 }
 0x738   :  { %2171 = vsyncpa [#allocation4], 1 }
 0x739   :  { %2172 = vsyncpa [#allocation7], 1 }
 0x73a   :  { %2173 = vsyncpa [#allocation5], 1 }

</bundles_post_ra>
